<compile_context>
chip_gen: v5e
topology: v5e:2x2
jax: 0.10.0
libtpu: 0.0.40
codegen_flags: <defaults>
</compile_context>

<pallas_src>
import jax
import jax.numpy as jnp
from jax import lax
from jax.experimental import pallas as pl
from jax.experimental.pallas import tpu as pltpu

# ---- static model config (small, deterministic, self-contained) ------------
IN_DIM = 8
HIDDEN = 32
NUM_LAYERS = 3
N_NODES = 16
BATCH = 2


def _make_kernel(batch_tile, num_layers, matmul_dtype, approx_recip):
    Bt = batch_tile

    def masked_softmax(s, neg):
        s = s + neg                                   # -1e30 off cross blocks
        m = jnp.max(s, axis=-1, keepdims=True)
        e = jnp.exp(s - m)
        d = jnp.sum(e, axis=-1, keepdims=True)
        if approx_recip:
            return e * pl.reciprocal(d, approx=True)  # EUP slot (has slack)
        return e / d

    def kernel(x_ref, adj_ref, diag_ref, neg_ref,
               w_in_ref, b_in_ref, w_hid_ref, b_hid_ref,
               w1t_ref, b1t_ref, w2t_ref, b2t_ref,
               out_ref):
        N = x_ref.shape[2]
        Din = x_ref.shape[3]
        G = 2 * Bt                      # graphs per tile
        M2 = G * N                      # flat node rows per tile
        cast = lambda v: v.astype(matmul_dtype)

        # All 2*Bt graphs of the tile as one flat node matrix [M2, Din]
        # (graph-1 blocks first, then graph-2 blocks; pair order preserved).
        h = x_ref[...].astype(jnp.float32).reshape(M2, Din)

        # Block-diagonal adjacency [M2, M2]; layer-invariant, built once per
        # grid step: lane-concat the compact [M2, N] rows and mask everything
        # off the same-graph diagonal blocks.
        adj2d = adj_ref[...].astype(jnp.float32).reshape(M2, N)
        adj_blk = jnp.concatenate([adj2d] * G, axis=1) * diag_ref[...]
        neg = neg_ref[...]              # additive mask: 0 on cross blocks

        def gmn_layer(h, w, bias):
            hc = cast(h)
            # one flat all-pairs score GEMM (contract-last, no transpose);
            # off-pair / same-graph blocks are killed by the -1e30 mask.
            s = lax.dot_general(hc, hc, (((1,), (1,)), ((), ())),
                                preferred_element_type=jnp.float32)   # [M2,M2]
            a = masked_softmax(s, neg)                                 # [M2,M2]
            # message passing + cross-graph matching in ONE GEMM:
            #   u = adj_blk @ h + (h - a @ h) = h + (adj_blk - a) @ h
            # (adj_blk and a live on disjoint blocks).
            u = h + jnp.dot(cast(adj_blk - a), hc,
                            preferred_element_type=jnp.float32)        # [M2,k]
            # fused shared Linear + ReLU over all 2*Bt*N node rows.
            z = jnp.dot(cast(u), cast(w),
                        preferred_element_type=jnp.float32) + bias
            return jnp.maximum(z, 0.0)

        # input layer (Din -> H), then num_layers-1 hidden layers (H -> H)
        h = gmn_layer(h, w_in_ref[...], b_in_ref[...])
        for l in range(num_layers - 1):
            h = gmn_layer(h, w_hid_ref[l], b_hid_ref[l])

        # sum pooling over nodes -> graph embeddings; fuse_type == 'abs_diff'
        e = jnp.sum(h.reshape(G, N, h.shape[-1]), axis=1)              # [2Bt,H]
        pair = jnp.abs(e[:Bt] - e[Bt:])                                 # [Bt,H]

        # pred_head (Linear -> ReLU -> Linear -> Sigmoid) with the batch kept
        # on the lane axis (weights pre-transposed in the wrapper) -> the
        # lane-dense [1, Bt] output row is produced directly.
        zt = lax.dot_general(cast(w1t_ref[...]), cast(pair),
                             (((1,), (1,)), ((), ())),
                             preferred_element_type=jnp.float32) + b1t_ref[...]
        zt = jnp.maximum(zt, 0.0)                                       # [2H,Bt]
        logit = jnp.dot(cast(w2t_ref[...]), cast(zt),
                        preferred_element_type=jnp.float32) + b2t_ref[...]
        out_ref[...] = jax.nn.sigmoid(logit).astype(out_ref.dtype)      # [1,Bt]

    return kernel


def _cost_estimate(b_pad, n, din, hidden, num_layers, bt):
    m2 = 2 * bt * n
    tiles = b_pad // bt
    flops, trans = 0, 0
    k = din
    for _ in range(num_layers):
        flops += tiles * (2 * m2 * m2 * k            # all-pairs score GEMM
                          + 2 * m2 * m2 * k          # combined propagate GEMM
                          + 2 * m2 * k * hidden)     # fused shared linear
        trans += tiles * (m2 * m2 + m2)              # exp + reciprocal
        k = hidden
    flops += tiles * (4 * bt * hidden * hidden + 4 * bt * hidden)   # pred head
    trans += b_pad                                                  # sigmoid
    bytes_accessed = 4 * (b_pad * 2 * (n * din + n * n)
                          + 2 * m2 * m2
                          + din * hidden + hidden
                          + (num_layers - 1) * (hidden * hidden + hidden)
                          + 2 * hidden * hidden + 2 * hidden + 2 * hidden + 1
                          + b_pad)
    return pl.CostEstimate(flops=int(flops), transcendentals=int(trans),
                           bytes_accessed=int(bytes_accessed))


def graph_matching_forward(x1, adj1, x2, adj2, params, *,
                           batch_tile=None, matmul_dtype=jnp.bfloat16,
                           approx_recip=True):
    B, N, Din = x1.shape
    H = params['w_in'].shape[-1]
    num_layers = params['w_hid'].shape[0] + 1

    if batch_tile is None:
        # Target a flat-GEMM side of 2*Bt*N ~= 512 rows (multiple of 128 for
        # v5e, 256-aligned for v6e/v7x MXUs).  Sweep per generation / VMEM
        # budget; on v7x keep num_tiles >= 2 so both TensorCores get work.
        batch_tile = max(1, min(B, max(1, 256 // N)))
    Bt = batch_tile

    num_tiles = pl.cdiv(B, Bt)
    B_pad = num_tiles * Bt
    if B_pad != B:                      # pad batch to a multiple of the tile
        pad = B_pad - B
        p3 = lambda a: jnp.pad(a, ((0, pad), (0, 0), (0, 0)))
        x1, adj1, x2, adj2 = p3(x1), p3(adj1), p3(x2), p3(adj2)

    # Pack both graphs of every pair -> one BlockSpec/DMA per tensor kind,
    # no in-kernel concatenates.
    x_packed = jnp.stack([x1, x2], axis=0)          # [2, B_pad, N, Din]
    adj_packed = jnp.stack([adj1, adj2], axis=0)    # [2, B_pad, N, N]

    # Layer- and tile-invariant block masks (built once, host side):
    #   diag_mask: 1 on same-graph (block-diagonal) blocks -> adjacency GEMM
    #   neg_mask : 0 on same-pair/other-graph blocks, -1e30 elsewhere -> attn
    M2 = 2 * Bt * N
    blk = jnp.repeat(jnp.arange(2 * Bt, dtype=jnp.int32), N)
    diag_mask = (blk[:, None] == blk[None, :]).astype(jnp.float32)
    neg_mask = jnp.where(jnp.abs(blk[:, None] - blk[None, :]) == Bt,
                         0.0, -1e30).astype(jnp.float32)

    # Pred-head weights transposed once outside the kernel so the kernel keeps
    # the batch on the lane axis and writes a lane-dense [1, Bt] row.
    w1t, b1t = params['w1'].T, params['b1'].T       # [2H, H], [2H, 1]
    w2t, b2t = params['w2'].T, params['b2'].T       # [1, 2H], [1, 1]

    kernel = _make_kernel(Bt, num_layers, matmul_dtype, approx_recip)

    const2 = lambda a: pl.BlockSpec(a.shape, lambda t: (0, 0))
    const3 = lambda a: pl.BlockSpec(a.shape, lambda t: (0, 0, 0))
    in_specs = [
        pl.BlockSpec((2, Bt, N, Din), lambda t: (0, t, 0, 0)),   # packed feats
        pl.BlockSpec((2, Bt, N, N), lambda t: (0, t, 0, 0)),     # packed adj
        const2(diag_mask), const2(neg_mask),
        const2(params['w_in']), const2(params['b_in']),
        const3(params['w_hid']), const3(params['b_hid']),
        const2(w1t), const2(b1t), const2(w2t), const2(b2t),
    ]
    # one lane-dense (1, Bt) output block per grid step -> batch axis can be
    # marked "parallel" (megacore-safe on v7x).
    out_spec = pl.BlockSpec((1, Bt), lambda t: (t, 0))

    out = pl.pallas_call(
        kernel,
        out_shape=jax.ShapeDtypeStruct((num_tiles, Bt), jnp.float32),
        grid=(num_tiles,),
        in_specs=in_specs,
        out_specs=out_spec,
        compiler_params=pltpu.CompilerParams(
            dimension_semantics=("parallel",),
            vmem_limit_bytes=32 * 1024 * 1024),
        cost_estimate=_cost_estimate(B_pad, N, Din, H, num_layers, Bt),
    )(x_packed, adj_packed, diag_mask, neg_mask,
      params['w_in'], params['b_in'], params['w_hid'], params['b_hid'],
      w1t, b1t, w2t, b2t)

    return out.reshape(B_pad, 1)[:B]


# ---------------- pure-JAX reference (for correctness check) ----------------
def _softmax_rows(s):
    m = jnp.max(s, axis=-1, keepdims=True)
    e = jnp.exp(s - m)
    return e / jnp.sum(e, axis=-1, keepdims=True)


def _gmnet_pair_ref(x1, adj1, x2, adj2, params):
    def layer(h1, h2, w, bias):
        m1 = adj1 @ h1
        m2 = adj2 @ h2
        s = h1 @ h2.T
        mu1 = h1 - _softmax_rows(s) @ h2
        mu2 = h2 - _softmax_rows(s.T) @ h1
        return (jax.nn.relu((m1 + mu1) @ w + bias),
                jax.nn.relu((m2 + mu2) @ w + bias))

    h1, h2 = layer(x1, x2, params['w_in'], params['b_in'])
    for l in range(NUM_LAYERS - 1):
        h1, h2 = layer(h1, h2, params['w_hid'][l], params['b_hid'][l])
    e1 = h1.sum(axis=0, keepdims=True)
    e2 = h2.sum(axis=0, keepdims=True)
    pair = jnp.abs(e1 - e2)
    z = jax.nn.relu(pair @ params['w1'] + params['b1'])
    return jax.nn.sigmoid(z @ params['w2'] + params['b2'])   # [1, 1]


def _init_params(key):
    ks = jax.random.split(key, 8)
    s = 0.1
    return {
        'w_in': s * jax.random.normal(ks[0], (IN_DIM, HIDDEN), jnp.float32),
        'b_in': s * jax.random.normal(ks[1], (1, HIDDEN), jnp.float32),
        'w_hid': s * jax.random.normal(
            ks[2], (NUM_LAYERS - 1, HIDDEN, HIDDEN), jnp.float32),
        'b_hid': s * jax.random.normal(
            ks[3], (NUM_LAYERS - 1, 1, HIDDEN), jnp.float32),
        'w1': s * jax.random.normal(ks[4], (HIDDEN, 2 * HIDDEN), jnp.float32),
        'b1': s * jax.random.normal(ks[5], (1, 2 * HIDDEN), jnp.float32),
        'w2': s * jax.random.normal(ks[6], (2 * HIDDEN, 1), jnp.float32),
        'b2': s * jax.random.normal(ks[7], (1, 1), jnp.float32),
    }


def _make_graph(key, B, N, D):
    kx, ka = jax.random.split(key)
    x = jax.random.normal(kx, (B, N, D), jnp.float32)
    a = (jax.random.uniform(ka, (B, N, N)) < 0.3).astype(jnp.float32)
    adj = jnp.maximum(a, jnp.transpose(a, (0, 2, 1)))   # symmetric
    return x, adj


if __name__ == "__main__":
    key = jax.random.PRNGKey(0)
    kp, k1, k2 = jax.random.split(key, 3)
    params = _init_params(kp)
    x1, adj1 = _make_graph(k1, BATCH, N_NODES, IN_DIM)
    x2, adj2 = _make_graph(k2, BATCH, N_NODES, IN_DIM)

    ref = jax.vmap(
        lambda a, b, c, d: _gmnet_pair_ref(a, b, c, d, params)
    )(x1, adj1, x2, adj2)[:, 0, :]                        # [B, 1]

    # exact path (f32 MXU operands, exact reciprocal): tight structural check
    prob_f32 = graph_matching_forward(x1, adj1, x2, adj2, params,
                                      matmul_dtype=jnp.float32,
                                      approx_recip=False)
    jax.block_until_ready(prob_f32)
    if not jnp.allclose(prob_f32, ref, rtol=2e-3, atol=2e-4):
        raise AssertionError(f"f32 mismatch: pallas={prob_f32} ref={ref}")

    # fast path (defaults: bf16 MXU operands + approx EUP reciprocal) -- the
    # production configuration for v6e/v7x; v5e users may prefer f32 operands.
    prob_fast = graph_matching_forward(x1, adj1, x2, adj2, params)
    jax.block_until_ready(prob_fast)
    if not jnp.allclose(prob_fast, ref, rtol=1e-1, atol=5e-2):
        raise AssertionError(f"bf16 mismatch: pallas={prob_fast} ref={ref}")

    print("KERNEL_OK")
</pallas_src>

<mosaic_0001>
module attributes {stable_mosaic.version = 11 : i64} {
  func.func @kernel(%arg0: i32, %arg1: memref<2x2x16x8xf32, #tpu.memory_space<vmem>>, %arg2: memref<2x2x16x16xf32, #tpu.memory_space<vmem>>, %arg3: memref<64x64xf32, #tpu.memory_space<vmem>>, %arg4: memref<64x64xf32, #tpu.memory_space<vmem>>, %arg5: memref<8x32xf32, #tpu.memory_space<vmem>>, %arg6: memref<1x32xf32, #tpu.memory_space<vmem>>, %arg7: memref<2x32x32xf32, #tpu.memory_space<vmem>>, %arg8: memref<2x1x32xf32, #tpu.memory_space<vmem>>, %arg9: memref<64x32xf32, #tpu.memory_space<vmem>>, %arg10: memref<64x1xf32, #tpu.memory_space<vmem>>, %arg11: memref<1x64xf32, #tpu.memory_space<vmem>>, %arg12: memref<1x1xf32, #tpu.memory_space<vmem>>, %arg13: memref<1x2xf32, #tpu.memory_space<vmem>>) attributes {dimension_semantics = [#tpu.dimension_semantics<parallel>], iteration_bounds = array<i64: 1>, scalar_prefetch = 0 : i64, scratch_operands = 0 : i64, tpu.core_type = #tpu.core_type<tc>, window_params = [{transform_indices = @transform_0, window_bounds = array<i64: 2, 2, 16, 8>}, {transform_indices = @transform_1, window_bounds = array<i64: 2, 2, 16, 16>}, {pipeline_mode = #tpu.pipeline_mode<synchronous>, transform_indices = @transform_2, window_bounds = array<i64: 64, 64>}, {pipeline_mode = #tpu.pipeline_mode<synchronous>, transform_indices = @transform_3, window_bounds = array<i64: 64, 64>}, {pipeline_mode = #tpu.pipeline_mode<synchronous>, transform_indices = @transform_4, window_bounds = array<i64: 8, 32>}, {pipeline_mode = #tpu.pipeline_mode<synchronous>, transform_indices = @transform_5, window_bounds = array<i64: 1, 32>}, {pipeline_mode = #tpu.pipeline_mode<synchronous>, transform_indices = @transform_6, window_bounds = array<i64: 2, 32, 32>}, {pipeline_mode = #tpu.pipeline_mode<synchronous>, transform_indices = @transform_7, window_bounds = array<i64: 2, 1, 32>}, {pipeline_mode = #tpu.pipeline_mode<synchronous>, transform_indices = @transform_8, window_bounds = array<i64: 64, 32>}, {pipeline_mode = #tpu.pipeline_mode<synchronous>, transform_indices = @transform_9, window_bounds = array<i64: 64, 1>}, {pipeline_mode = #tpu.pipeline_mode<synchronous>, transform_indices = @transform_10, window_bounds = array<i64: 1, 64>}, {pipeline_mode = #tpu.pipeline_mode<synchronous>, transform_indices = @transform_11, window_bounds = array<i64: 1, 1>}, {transform_indices = @transform_12, window_bounds = array<i64: 1, 2>}]} {
    %c0 = arith.constant 0 : index
    %c0_0 = arith.constant 0 : index
    %c0_1 = arith.constant 0 : index
    %c0_2 = arith.constant 0 : index
    %0 = vector.load %arg1[%c0, %c0_0, %c0_1, %c0_2] : memref<2x2x16x8xf32, #tpu.memory_space<vmem>>, vector<2x2x16x8xf32>
    %1 = vector.shape_cast %0 : vector<2x2x16x8xf32> to vector<64x8xf32>
    %c0_3 = arith.constant 0 : index
    %c0_4 = arith.constant 0 : index
    %c0_5 = arith.constant 0 : index
    %c0_6 = arith.constant 0 : index
    %2 = vector.load %arg2[%c0_3, %c0_4, %c0_5, %c0_6] : memref<2x2x16x16xf32, #tpu.memory_space<vmem>>, vector<2x2x16x16xf32>
    %3 = vector.shape_cast %2 : vector<2x2x16x16xf32> to vector<64x16xf32>
    %4 = tpu.concatenate %3, %3, %3, %3 in 1 : vector<64x16xf32>, vector<64x16xf32>, vector<64x16xf32>, vector<64x16xf32> -> vector<64x64xf32>
    %c0_7 = arith.constant 0 : index
    %c0_8 = arith.constant 0 : index
    %5 = vector.load %arg3[%c0_7, %c0_8] : memref<64x64xf32, #tpu.memory_space<vmem>>, vector<64x64xf32>
    %6 = arith.mulf %4, %5 : vector<64x64xf32>
    %c0_9 = arith.constant 0 : index
    %c0_10 = arith.constant 0 : index
    %7 = vector.load %arg4[%c0_9, %c0_10] : memref<64x64xf32, #tpu.memory_space<vmem>>, vector<64x64xf32>
    %c0_11 = arith.constant 0 : index
    %c0_12 = arith.constant 0 : index
    %8 = vector.load %arg5[%c0_11, %c0_12] : memref<8x32xf32, #tpu.memory_space<vmem>>, vector<8x32xf32>
    %c0_13 = arith.constant 0 : index
    %c0_14 = arith.constant 0 : index
    %9 = vector.load %arg6[%c0_13, %c0_14] : memref<1x32xf32, #tpu.memory_space<vmem>>, vector<1x32xf32>
    %cst = arith.constant dense<0.000000e+00> : vector<64x64xf32>
    %10 = tpu.matmul %1, %1, %cst {dimension_numbers = #tpu.dot_dimension_numbers<[1], [1], [0], [0], [0, 0, 1, 0], [], []>} : vector<64x8xf32>, vector<64x8xf32>, vector<64x64xf32> -> vector<64x64xf32>
    %11 = arith.addf %10, %7 : vector<64x64xf32>
    %cst_15 = arith.constant dense<0xFF800000> : vector<64xf32>
    %12 = vector.multi_reduction <maximumf>, %11, %cst_15 [1] : vector<64x64xf32> to vector<64xf32>
    %13 = vector.shape_cast %12 : vector<64xf32> to vector<64x1xf32>
    %14 = vector.broadcast %13 : vector<64x1xf32> to vector<64x64xf32>
    %15 = arith.subf %11, %14 : vector<64x64xf32>
    %16 = math.exp %15 : vector<64x64xf32>
    %cst_16 = arith.constant dense<0.000000e+00> : vector<64xf32>
    %17 = vector.multi_reduction <add>, %16, %cst_16 [1] : vector<64x64xf32> to vector<64xf32>
    %18 = vector.shape_cast %17 : vector<64xf32> to vector<64x1xf32>
    %19 = vector.broadcast %18 : vector<64x1xf32> to vector<64x64xf32>
    %20 = arith.divf %16, %19 : vector<64x64xf32>
    %21 = arith.subf %6, %20 : vector<64x64xf32>
    %cst_17 = arith.constant dense<0.000000e+00> : vector<64x8xf32>
    %22 = tpu.matmul %21, %1, %cst_17 {dimension_numbers = #tpu.dot_dimension_numbers<[1], [0], [0], [1], [0, 0, 1, 1], [], []>} : vector<64x64xf32>, vector<64x8xf32>, vector<64x8xf32> -> vector<64x8xf32>
    %23 = arith.addf %1, %22 : vector<64x8xf32>
    %cst_18 = arith.constant dense<0.000000e+00> : vector<64x32xf32>
    %24 = tpu.matmul %23, %8, %cst_18 {dimension_numbers = #tpu.dot_dimension_numbers<[1], [0], [0], [1], [0, 0, 1, 1], [], []>} : vector<64x8xf32>, vector<8x32xf32>, vector<64x32xf32> -> vector<64x32xf32>
    %25 = vector.broadcast %9 : vector<1x32xf32> to vector<64x32xf32>
    %26 = arith.addf %24, %25 : vector<64x32xf32>
    %cst_19 = arith.constant 0.000000e+00 : f32
    %27 = vector.broadcast %cst_19 : f32 to vector<64x32xf32>
    %28 = arith.maximumf %26, %27 : vector<64x32xf32>
    %c0_20 = arith.constant 0 : index
    %c0_21 = arith.constant 0 : index
    %c0_22 = arith.constant 0 : index
    %29 = vector.load %arg7[%c0_20, %c0_21, %c0_22] : memref<2x32x32xf32, #tpu.memory_space<vmem>>, vector<1x32x32xf32>
    %30 = vector.shape_cast %29 : vector<1x32x32xf32> to vector<32x32xf32>
    %c0_23 = arith.constant 0 : index
    %c0_24 = arith.constant 0 : index
    %c0_25 = arith.constant 0 : index
    %31 = vector.load %arg8[%c0_23, %c0_24, %c0_25] : memref<2x1x32xf32, #tpu.memory_space<vmem>>, vector<1x1x32xf32>
    %32 = vector.shape_cast %31 : vector<1x1x32xf32> to vector<1x32xf32>
    %cst_26 = arith.constant dense<0.000000e+00> : vector<64x64xf32>
    %33 = tpu.matmul %28, %28, %cst_26 {dimension_numbers = #tpu.dot_dimension_numbers<[1], [1], [0], [0], [0, 0, 1, 0], [], []>} : vector<64x32xf32>, vector<64x32xf32>, vector<64x64xf32> -> vector<64x64xf32>
    %34 = arith.addf %33, %7 : vector<64x64xf32>
    %cst_27 = arith.constant dense<0xFF800000> : vector<64xf32>
    %35 = vector.multi_reduction <maximumf>, %34, %cst_27 [1] : vector<64x64xf32> to vector<64xf32>
    %36 = vector.shape_cast %35 : vector<64xf32> to vector<64x1xf32>
    %37 = vector.broadcast %36 : vector<64x1xf32> to vector<64x64xf32>
    %38 = arith.subf %34, %37 : vector<64x64xf32>
    %39 = math.exp %38 : vector<64x64xf32>
    %cst_28 = arith.constant dense<0.000000e+00> : vector<64xf32>
    %40 = vector.multi_reduction <add>, %39, %cst_28 [1] : vector<64x64xf32> to vector<64xf32>
    %41 = vector.shape_cast %40 : vector<64xf32> to vector<64x1xf32>
    %42 = vector.broadcast %41 : vector<64x1xf32> to vector<64x64xf32>
    %43 = arith.divf %39, %42 : vector<64x64xf32>
    %44 = arith.subf %6, %43 : vector<64x64xf32>
    %cst_29 = arith.constant dense<0.000000e+00> : vector<64x32xf32>
    %45 = tpu.matmul %44, %28, %cst_29 {dimension_numbers = #tpu.dot_dimension_numbers<[1], [0], [0], [1], [0, 0, 1, 1], [], []>} : vector<64x64xf32>, vector<64x32xf32>, vector<64x32xf32> -> vector<64x32xf32>
    %46 = arith.addf %28, %45 : vector<64x32xf32>
    %cst_30 = arith.constant dense<0.000000e+00> : vector<64x32xf32>
    %47 = tpu.matmul %46, %30, %cst_30 {dimension_numbers = #tpu.dot_dimension_numbers<[1], [0], [0], [1], [0, 0, 1, 1], [], []>} : vector<64x32xf32>, vector<32x32xf32>, vector<64x32xf32> -> vector<64x32xf32>
    %48 = vector.broadcast %32 : vector<1x32xf32> to vector<64x32xf32>
    %49 = arith.addf %47, %48 : vector<64x32xf32>
    %cst_31 = arith.constant 0.000000e+00 : f32
    %50 = vector.broadcast %cst_31 : f32 to vector<64x32xf32>
    %51 = arith.maximumf %49, %50 : vector<64x32xf32>
    %c1 = arith.constant 1 : index
    %c0_32 = arith.constant 0 : index
    %c0_33 = arith.constant 0 : index
    %52 = vector.load %arg7[%c1, %c0_32, %c0_33] : memref<2x32x32xf32, #tpu.memory_space<vmem>>, vector<1x32x32xf32>
    %53 = vector.shape_cast %52 : vector<1x32x32xf32> to vector<32x32xf32>
    %c1_34 = arith.constant 1 : index
    %c0_35 = arith.constant 0 : index
    %c0_36 = arith.constant 0 : index
    %54 = vector.load %arg8[%c1_34, %c0_35, %c0_36] : memref<2x1x32xf32, #tpu.memory_space<vmem>>, vector<1x1x32xf32>
    %55 = vector.shape_cast %54 : vector<1x1x32xf32> to vector<1x32xf32>
    %cst_37 = arith.constant dense<0.000000e+00> : vector<64x64xf32>
    %56 = tpu.matmul %51, %51, %cst_37 {dimension_numbers = #tpu.dot_dimension_numbers<[1], [1], [0], [0], [0, 0, 1, 0], [], []>} : vector<64x32xf32>, vector<64x32xf32>, vector<64x64xf32> -> vector<64x64xf32>
    %57 = arith.addf %56, %7 : vector<64x64xf32>
    %cst_38 = arith.constant dense<0xFF800000> : vector<64xf32>
    %58 = vector.multi_reduction <maximumf>, %57, %cst_38 [1] : vector<64x64xf32> to vector<64xf32>
    %59 = vector.shape_cast %58 : vector<64xf32> to vector<64x1xf32>
    %60 = vector.broadcast %59 : vector<64x1xf32> to vector<64x64xf32>
    %61 = arith.subf %57, %60 : vector<64x64xf32>
    %62 = math.exp %61 : vector<64x64xf32>
    %cst_39 = arith.constant dense<0.000000e+00> : vector<64xf32>
    %63 = vector.multi_reduction <add>, %62, %cst_39 [1] : vector<64x64xf32> to vector<64xf32>
    %64 = vector.shape_cast %63 : vector<64xf32> to vector<64x1xf32>
    %65 = vector.broadcast %64 : vector<64x1xf32> to vector<64x64xf32>
    %66 = arith.divf %62, %65 : vector<64x64xf32>
    %67 = arith.subf %6, %66 : vector<64x64xf32>
    %cst_40 = arith.constant dense<0.000000e+00> : vector<64x32xf32>
    %68 = tpu.matmul %67, %51, %cst_40 {dimension_numbers = #tpu.dot_dimension_numbers<[1], [0], [0], [1], [0, 0, 1, 1], [], []>} : vector<64x64xf32>, vector<64x32xf32>, vector<64x32xf32> -> vector<64x32xf32>
    %69 = arith.addf %51, %68 : vector<64x32xf32>
    %cst_41 = arith.constant dense<0.000000e+00> : vector<64x32xf32>
    %70 = tpu.matmul %69, %53, %cst_41 {dimension_numbers = #tpu.dot_dimension_numbers<[1], [0], [0], [1], [0, 0, 1, 1], [], []>} : vector<64x32xf32>, vector<32x32xf32>, vector<64x32xf32> -> vector<64x32xf32>
    %71 = vector.broadcast %55 : vector<1x32xf32> to vector<64x32xf32>
    %72 = arith.addf %70, %71 : vector<64x32xf32>
    %cst_42 = arith.constant 0.000000e+00 : f32
    %73 = vector.broadcast %cst_42 : f32 to vector<64x32xf32>
    %74 = arith.maximumf %72, %73 : vector<64x32xf32>
    %75 = vector.shape_cast %74 : vector<64x32xf32> to vector<4x16x32xf32>
    %cst_43 = arith.constant dense<0.000000e+00> : vector<4x32xf32>
    %76 = vector.multi_reduction <add>, %75, %cst_43 [1] : vector<4x16x32xf32> to vector<4x32xf32>
    %77 = vector.extract_strided_slice %76 {offsets = [0, 0], sizes = [2, 32], strides = [1, 1]} : vector<4x32xf32> to vector<2x32xf32>
    %78 = vector.extract_strided_slice %76 {offsets = [2, 0], sizes = [2, 32], strides = [1, 1]} : vector<4x32xf32> to vector<2x32xf32>
    %79 = arith.subf %77, %78 : vector<2x32xf32>
    %80 = math.absf %79 : vector<2x32xf32>
    %c0_44 = arith.constant 0 : index
    %c0_45 = arith.constant 0 : index
    %81 = vector.load %arg9[%c0_44, %c0_45] : memref<64x32xf32, #tpu.memory_space<vmem>>, vector<64x32xf32>
    %cst_46 = arith.constant dense<0.000000e+00> : vector<64x2xf32>
    %82 = tpu.matmul %81, %80, %cst_46 {dimension_numbers = #tpu.dot_dimension_numbers<[1], [1], [0], [0], [0, 0, 1, 0], [], []>} : vector<64x32xf32>, vector<2x32xf32>, vector<64x2xf32> -> vector<64x2xf32>
    %c0_47 = arith.constant 0 : index
    %c0_48 = arith.constant 0 : index
    %83 = vector.load %arg10[%c0_47, %c0_48] : memref<64x1xf32, #tpu.memory_space<vmem>>, vector<64x1xf32>
    %84 = vector.broadcast %83 : vector<64x1xf32> to vector<64x2xf32>
    %85 = arith.addf %82, %84 : vector<64x2xf32>
    %cst_49 = arith.constant 0.000000e+00 : f32
    %86 = vector.broadcast %cst_49 : f32 to vector<64x2xf32>
    %87 = arith.maximumf %85, %86 : vector<64x2xf32>
    %c0_50 = arith.constant 0 : index
    %c0_51 = arith.constant 0 : index
    %88 = vector.load %arg11[%c0_50, %c0_51] : memref<1x64xf32, #tpu.memory_space<vmem>>, vector<1x64xf32>
    %cst_52 = arith.constant dense<0.000000e+00> : vector<1x2xf32>
    %89 = tpu.matmul %88, %87, %cst_52 {dimension_numbers = #tpu.dot_dimension_numbers<[1], [0], [0], [1], [0, 0, 1, 1], [], []>} : vector<1x64xf32>, vector<64x2xf32>, vector<1x2xf32> -> vector<1x2xf32>
    %c0_53 = arith.constant 0 : index
    %c0_54 = arith.constant 0 : index
    %90 = vector.load %arg12[%c0_53, %c0_54] : memref<1x1xf32, #tpu.memory_space<vmem>>, vector<1x1xf32>
    %91 = vector.broadcast %90 : vector<1x1xf32> to vector<1x2xf32>
    %92 = arith.addf %89, %91 : vector<1x2xf32>
    %93 = arith.negf %92 : vector<1x2xf32>
    %94 = math.exp %93 : vector<1x2xf32>
    %cst_55 = arith.constant 1.000000e+00 : f32
    %95 = vector.broadcast %cst_55 : f32 to vector<1x2xf32>
    %96 = arith.addf %95, %94 : vector<1x2xf32>
    %97 = arith.divf %95, %96 : vector<1x2xf32>
    %c0_56 = arith.constant 0 : index
    %c0_57 = arith.constant 0 : index
    %98 = vector.load %arg13[%c0_56, %c0_57] : memref<1x2xf32, #tpu.memory_space<vmem>>, vector<1x2xf32>
    tpu.vector_store %arg13[%c0_56, %c0_57], %97 {strides = array<i32>} : memref<1x2xf32, #tpu.memory_space<vmem>>, vector<1x2xf32>,
    return
  }
  func.func @transform_0(%arg0: i32) -> (i32, i32, i32, i32) {
    %c0_i32 = arith.constant 0 : i32
    %c0_i32_0 = arith.constant 0 : i32
    %c0_i32_1 = arith.constant 0 : i32
    %c0_i32_2 = arith.constant 0 : i32
    return %c0_i32, %arg0, %c0_i32_0, %c0_i32_1 : i32, i32, i32, i32
  }
  func.func @transform_1(%arg0: i32) -> (i32, i32, i32, i32) {
    %c0_i32 = arith.constant 0 : i32
    %c0_i32_0 = arith.constant 0 : i32
    %c0_i32_1 = arith.constant 0 : i32
    %c0_i32_2 = arith.constant 0 : i32
    return %c0_i32, %arg0, %c0_i32_0, %c0_i32_1 : i32, i32, i32, i32
  }
  func.func @transform_2(%arg0: i32) -> (i32, i32) {
    %c0_i32 = arith.constant 0 : i32
    %c0_i32_0 = arith.constant 0 : i32
    %c0_i32_1 = arith.constant 0 : i32
    return %c0_i32, %c0_i32_0 : i32, i32
  }
  func.func @transform_3(%arg0: i32) -> (i32, i32) {
    %c0_i32 = arith.constant 0 : i32
    %c0_i32_0 = arith.constant 0 : i32
    %c0_i32_1 = arith.constant 0 : i32
    return %c0_i32, %c0_i32_0 : i32, i32
  }
  func.func @transform_4(%arg0: i32) -> (i32, i32) {
    %c0_i32 = arith.constant 0 : i32
    %c0_i32_0 = arith.constant 0 : i32
    %c0_i32_1 = arith.constant 0 : i32
    return %c0_i32, %c0_i32_0 : i32, i32
  }
  func.func @transform_5(%arg0: i32) -> (i32, i32) {
    %c0_i32 = arith.constant 0 : i32
    %c0_i32_0 = arith.constant 0 : i32
    %c0_i32_1 = arith.constant 0 : i32
    return %c0_i32, %c0_i32_0 : i32, i32
  }
  func.func @transform_6(%arg0: i32) -> (i32, i32, i32) {
    %c0_i32 = arith.constant 0 : i32
    %c0_i32_0 = arith.constant 0 : i32
    %c0_i32_1 = arith.constant 0 : i32
    %c0_i32_2 = arith.constant 0 : i32
    return %c0_i32, %c0_i32_0, %c0_i32_1 : i32, i32, i32
  }
  func.func @transform_7(%arg0: i32) -> (i32, i32, i32) {
    %c0_i32 = arith.constant 0 : i32
    %c0_i32_0 = arith.constant 0 : i32
    %c0_i32_1 = arith.constant 0 : i32
    %c0_i32_2 = arith.constant 0 : i32
    return %c0_i32, %c0_i32_0, %c0_i32_1 : i32, i32, i32
  }
  func.func @transform_8(%arg0: i32) -> (i32, i32) {
    %c0_i32 = arith.constant 0 : i32
    %c0_i32_0 = arith.constant 0 : i32
    %c0_i32_1 = arith.constant 0 : i32
    return %c0_i32, %c0_i32_0 : i32, i32
  }
  func.func @transform_9(%arg0: i32) -> (i32, i32) {
    %c0_i32 = arith.constant 0 : i32
    %c0_i32_0 = arith.constant 0 : i32
    %c0_i32_1 = arith.constant 0 : i32
    return %c0_i32, %c0_i32_0 : i32, i32
  }
  func.func @transform_10(%arg0: i32) -> (i32, i32) {
    %c0_i32 = arith.constant 0 : i32
    %c0_i32_0 = arith.constant 0 : i32
    %c0_i32_1 = arith.constant 0 : i32
    return %c0_i32, %c0_i32_0 : i32, i32
  }
  func.func @transform_11(%arg0: i32) -> (i32, i32) {
    %c0_i32 = arith.constant 0 : i32
    %c0_i32_0 = arith.constant 0 : i32
    %c0_i32_1 = arith.constant 0 : i32
    return %c0_i32, %c0_i32_0 : i32, i32
  }
  func.func @transform_12(%arg0: i32) -> (i32, i32) {
    %c0_i32 = arith.constant 0 : i32
    %c0_i32_0 = arith.constant 0 : i32
    return %arg0, %c0_i32 : i32, i32
  }
}

</mosaic_0001>

<bundles_post_ra>
// kernel: tpu_custom_call.1
= control target key start
LH: loop header
LB: loop body
LE: loop exit
PB: predicated region body
PF: predicated region fallthrough
CT: control target
= control target key end

     0   :  { %s2884_s0 = inlined_call_operand.vmem [shape: f32[2,2,16,8], index: 0, kind: input, shape index: {}]   ;;  %s2885_s1 = inlined_call_operand.vmem [shape: f32[2,2,16,16], index: 1, kind: input, shape index: {}]   ;;  %s2886_s2 = inlined_call_operand.vmem [shape: f32[64,64], index: 2, kind: input, shape index: {}]   ;;  %s2887_s3 = inlined_call_operand.vmem [shape: f32[64,64], index: 3, kind: input, shape index: {}]   ;;  %s2888_s4 = inlined_call_operand.hbm [shape: f32[8,32], index: 4, kind: input, shape index: {}]   ;;  %s2889_s5 = inlined_call_operand.vmem [shape: f32[1,32], index: 5, kind: input, shape index: {}]   ;;  %s2890_s6 = inlined_call_operand.vmem [shape: f32[2,32,32], index: 6, kind: input, shape index: {}]   ;;  %s2891_s7 = inlined_call_operand.vmem [shape: f32[2,1,32], index: 7, kind: input, shape index: {}]   ;;  %s2892_s8 = inlined_call_operand.vmem [shape: f32[64,32], index: 8, kind: input, shape index: {}]   ;;  %s2893_s9 = inlined_call_operand.vmem [shape: f32[64,1], index: 9, kind: input, shape index: {}]   ;;  %s2894_s10 = inlined_call_operand.vmem [shape: f32[1,64], index: 10, kind: input, shape index: {}]   ;;  %s2895_s11 = inlined_call_operand.<no memory space> [shape: f32[1,1], index: 11, kind: input, shape index: {}]   ;;  %s2896_s12 = inlined_call_operand.hbm [shape: f32[1,2], index: 12, kind: output, shape index: {}]  }
   0x1   :  { %v17_v0 = vstv %s2895_s11 }
   0x2   :  { %18 = vst [vmem:[#allocation2] sm:$0x1] %v17_v0 }
   0x3   :  { %19 = vsyncpa [#allocation4], 0 }
   0x4   :  { %20 = vsyncpa [#allocation5], 0  ;;  %s34_s25 = sshll.u32 %s2888_s4, 4  ;;  %s1995_s26 = smov [#allocation3]   ;;  %s35_s25 = int_to_ptr.hbm [resolvable:$true] %s34_s25 }
   0x5   :  { %s36_s27 = sshll.u32 %s1995_s26, 4  ;;  %s37_s27 = int_to_ptr.vmem [resolvable:$true] %s36_s27 }
   0x6   :  { %39 = dma.hbm_to_vmem [thread:$0]  %s35_s25, 128, %s37_s27, [#allocation4]  }
   0x7   :  { %1991 = dma.done.wait [#allocation4], 128  }
   0x8   :  { %1992 = vsyncadd [#allocation4], 4294967168  ;;  %vm207_vm0 = vcmask 64512   ;;  %v2075_v1 = vld [vmem:[%s2884_s0 + $0x38] sm:$0xff]  ;;  %v2083_v2 = vld [vmem:[%s2884_s0 + $0x30] sm:$0xff]  ;;  %s1996_s25 = smov 16  }
   0x9   :  { %1707 = vmatpush.xpose.msk.msra.mxu0 %vm207_vm0, %v2075_v1  ;;  %506 = vmatpush.msra.mxu1 %v2075_v1  ;;  %v2089_v3 = vld [vmem:[%s2884_s0 + $0x28] sm:$0xff]  ;;  %v2097_v4 = vld [vmem:[%s2884_s0 + $0x20] sm:$0xff]  ;;  %v2103_v5 = vld [vmem:[%s2884_s0 + $0x18] sm:$0xff]  ;;  %s1997_s26 = smov 48   ;;  %s1998_s27 = smov 32   ;;  %vm273_vm1 = vcmask 523264  }
   0xa   :  { %v2111_v6 = vld [vmem:[%s2884_s0 + $0x10] sm:$0xff]  ;;  %v2117_v7 = vld [vmem:[%s2884_s0 + $0x8] sm:$0xff]  ;;  %v2125_v8 = vld [vmem:[%s2884_s0] sm:$0xff]  ;;  %vm154_vm2 = vcmask 130048   ;;  %vm163_vm3 = vcmask 261120   ;;  %vm172_vm4 = vcmask 392192  }
   0xb   :  { %507 = vmatpush.msra.mxu1 %v2083_v2  ;;  %v66_v9 = vld [vmem:[%s2885_s1] sm:$0xff]  ;;  %v67_v10 = vld [vmem:[%s2885_s1 + $0x8] sm:$0xff]  ;;  %v68_v11 = vld [vmem:[%s2885_s1 + $0x10] sm:$0xff]  ;;  %s1697_s29 = sshll.u32 %s2896_s12, 4  ;;  %s1698_s29 = int_to_ptr.hbm [resolvable:$true] %s1697_s29 }
   0xc   :  { %82 = vrot.lane.b32.xlu1 %v66_v9, %s1996_s25  ;;  %130 = vrot.lane.b32.xlu0 %v66_v9, %s1997_s26  ;;  %v2161_v12 = vld [vmem:[%s2885_s1 + $0x18] sm:$0xff]  ;;  %v2170_v13 = vld [vmem:[%s2885_s1 + $0x20] sm:$0xff] }
   0xd   :  { %1708 = vmatpush.xpose.msk.msra.mxu0 %vm207_vm0, %v2083_v2  ;;  %508 = vmatpush.msra.mxu1 %v2089_v3  ;;  %v2195_v14 = vld [vmem:[%s2887_s3] sm:$0xff]  ;;  %v2205_v19 = vld [vmem:[%s2887_s3 + $0x8] sm:$0xff]  ;;  %v2217_v28 = vld [vmem:[%s2887_s3 + $0x10] sm:$0xff] }
   0xe   :  { %106 = vrot.lane.b32.xlu2 %v66_v9, %s1998_s27  ;;  %v2232_v38 = vld [vmem:[%s2887_s3 + $0x18] sm:$0xff]  ;;  %v2244_v46 = vld [vmem:[%s2887_s3 + $0x20] sm:$0xff]  ;;  %v2254_v52 = vld [vmem:[%s2887_s3 + $0x28] sm:$0xff] }
   0xf   :  { %509 = vmatpush.msra.mxu1 %v2097_v4  ;;  %v2264_v57 = vld [vmem:[%s2887_s3 + $0x30] sm:$0xff]  ;;  %v2273_v0 = vld [vmem:[%s2885_s1 + $0x28] sm:$0xff] }
  0x11   :  { %1709 = vmatpush.xpose.msk.msra.mxu0 %vm207_vm0, %v2089_v3  ;;  %510 = vmatpush.msra.mxu1 %v2103_v5 }
  0x13   :  { %511 = vmatpush.msra.mxu1 %v2111_v6 }
  0x14   :  { %108 = vrot.lane.b32.xlu1 %v67_v10, %s1998_s27  ;;  %86 = vrot.lane.b32.xlu0 %v68_v11, %s1996_s25 }
  0x15   :  { %1710 = vmatpush.xpose.msk.msra.mxu0 %vm207_vm0, %v2097_v4  ;;  %512 = vmatpush.msra.mxu1 %v2117_v7 }
  0x16   :  { %84 = vrot.lane.b32.xlu2 %v67_v10, %s1996_s25 }
  0x17   :  { %513 = vmatpush.msra.mxu1 %v2125_v8 }
  0x19   :  { %1711 = vmatpush.xpose.msk.msra.mxu0 %vm207_vm0, %v2103_v5 }
  0x1c   :  { %132 = vrot.lane.b32.xlu1 %v67_v10, %s1997_s26  ;;  %90 = vrot.lane.b32.xlu0 %v2170_v13, %s1996_s25 }
  0x1d   :  { %1712 = vmatpush.xpose.msk.msra.mxu0 %vm207_vm0, %v2111_v6 }
  0x1e   :  { %136 = vrot.lane.b32.xlu2 %v2161_v12, %s1997_s26 }
  0x21   :  { %1713 = vmatpush.xpose.msk.msra.mxu0 %vm207_vm0, %v2117_v7 }
  0x24   :  { %110 = vrot.lane.b32.xlu1 %v68_v11, %s1998_s27  ;;  %138 = vrot.lane.b32.xlu0 %v2170_v13, %s1997_s26 }
  0x25   :  { %1714 = vmatpush.xpose.msk.msra.mxu0 %vm207_vm0, %v2125_v8 }
  0x26   :  { %114 = vrot.lane.b32.xlu2 %v2170_v13, %s1998_s27 }
  0x28   :  { %1715 = vmatmul.msk.f32.vlgmr.msra.gmra.mxu0 %vm207_vm0, %v2125_v8 }
  0x2c   :  { %134 = vrot.lane.b32.xlu1 %v68_v11, %s1997_s26 }
  0x30   :  { %1716 = vmatmul.msk.f32.gmra.mxu0 %vm207_vm0, %v2117_v7 }
  0x34   :  { %88 = vrot.lane.b32.xlu1 %v2161_v12, %s1996_s25 }
  0x38   :  { %1717 = vmatmul.msk.f32.gmra.mxu0 %vm207_vm0, %v2111_v6 }
  0x3c   :  { %112 = vrot.lane.b32.xlu1 %v2161_v12, %s1998_s27 }
  0x40   :  { %1718 = vmatmul.msk.f32.gmra.mxu0 %vm207_vm0, %v2103_v5 }
  0x48   :  { %1719 = vmatmul.msk.f32.gmra.mxu0 %vm207_vm0, %v2097_v4 }
  0x50   :  { %1720 = vmatmul.msk.f32.gmra.mxu0 %vm207_vm0, %v2089_v3 }
  0x58   :  { %1721 = vmatmul.msk.f32.gmra.mxu0 %vm207_vm0, %v2083_v2 }
  0x60   :  { %1722 = vmatmul.msk.f32.gmra.mxu0 %vm207_vm0, %v2075_v1 }
  0x68   :  { %v107_v25 = vpop.permute.xlu2 %106 }
  0x70   :  { %v85_v34 = vpop.permute.xlu2 %84 }
  0x71   :  { %v156_v36 = vsel %vm154_vm2, %v67_v10, %v85_v34 }
  0x78   :  { %v137_v62 = vpop.permute.xlu2 %136 }
  0x7e   :  { %v83_v15 = vpop.permute.xlu1 %82  ;;  %v131_v26 = vpop.permute.xlu0 %130 }
  0x7f   :  { %v155_v23 = vsel %vm154_vm2, %v66_v9, %v83_v15 }
  0x80   :  { %v164_v27 = vsel %vm163_vm3, %v155_v23, %v107_v25 }
  0x81   :  { %v2220_v29 = vsel %vm172_vm4, %v164_v27, %v131_v26 }
  0x86   :  { %v109_v20 = vpop.permute.xlu1 %108  ;;  %v87_v35 = vpop.permute.xlu0 %86 }
  0x87   :  { %v157_v37 = vsel %vm154_vm2, %v68_v11, %v87_v35  ;;  %v165_v39 = vsel %vm163_vm3, %v156_v36, %v109_v20  ;;  %v2284_v11 = vld [vmem:[%s2887_s3 + $0x38] sm:$0xff] }
  0x8e   :  { %v133_v30 = vpop.permute.xlu1 %132  ;;  %v2301_v20 = vpop.permute.xlu0 %90 }
  0x8f   :  { %v2236_v41 = vsel %vm172_vm4, %v165_v39, %v133_v30 }
  0x96   :  { %v111_v40 = vpop.permute.xlu1 %110 }
  0x97   :  { %v166_v42 = vsel %vm163_vm3, %v157_v37, %v111_v40 }
  0x9e   :  { %v135_v47 = vpop.permute.xlu1 %134 }
  0x9f   :  { %v2247_v48 = vsel %vm172_vm4, %v166_v42, %v135_v47 }
  0xa5   :  { %v249_v16 = vpop.f32.mrf.mxu0 }
  0xa6   :  { %v2198_v17 = vadd.f32 %v249_v16, %v2195_v14  ;;  %v89_v54 = vpop.permute.xlu1 %88 }
  0xa7   :  { %v158_v58 = vsel %vm154_vm2, %v2161_v12, %v89_v54 }
  0xa8   :  { %v274_v18 = vsel %vm273_vm1, %v2198_v17, -inf }
  0xa9   :  { %275 = vmax.xlane.f32.xlu0 %v274_v18  ;;  %v2293_v18 = vld [vmem:[%s2885_s1 + $0x30] sm:$0xff] }
  0xad   :  { %v252_v21 = vpop.f32.mrf.mxu0 }
  0xae   :  { %v2208_v22 = vadd.f32 %v252_v21, %v2205_v19  ;;  %v113_v60 = vpop.permute.xlu1 %112  ;;  %v2303_v21 = vpop.permute.xlu0 %138 }
  0xaf   :  { %v167_v63 = vsel %vm163_vm3, %v158_v58, %v113_v60 }
  0xb0   :  { %v277_v24 = vsel %vm273_vm1, %v2208_v22, -inf  ;;  %v2276_v9 = vsel %vm172_vm4, %v167_v63, %v137_v62 }
  0xb1   :  { %278 = vmax.xlane.f32.xlu0 %v277_v24 }
  0xb5   :  { %v255_v31 = vpop.f32.mrf.mxu0 }
  0xb6   :  { %v2223_v32 = vadd.f32 %v255_v31, %v2217_v28 }
  0xb8   :  { %v280_v33 = vsel %vm273_vm1, %v2223_v32, -inf }
  0xb9   :  { %281 = vmax.xlane.f32.xlu1 %v280_v33 }
  0xbd   :  { %v258_v43 = vpop.f32.mrf.mxu0 }
  0xbe   :  { %v259_v44 = vadd.f32 %v258_v43, %v2232_v38 }
  0xc0   :  { %v283_v45 = vsel %vm273_vm1, %v259_v44, -inf }
  0xc1   :  { %284 = vmax.xlane.f32.xlu1 %v283_v45 }
  0xc5   :  { %v261_v49 = vpop.f32.mrf.mxu0 }
  0xc6   :  { %v262_v50 = vadd.f32 %v261_v49, %v2244_v46 }
  0xc8   :  { %v286_v51 = vsel %vm273_vm1, %v262_v50, -inf }
  0xc9   :  { %287 = vmax.xlane.f32.xlu2 %v286_v51 }
  0xcd   :  { %v264_v53 = vpop.f32.mrf.mxu0 }
  0xce   :  { %v2257_v55 = vadd.f32 %v264_v53, %v2254_v52 }
  0xd0   :  { %v289_v56 = vsel %vm273_vm1, %v2257_v55, -inf }
  0xd1   :  { %290 = vmax.xlane.f32.xlu2 %v289_v56 }
  0xd5   :  { %v267_v59 = vpop.f32.mrf.mxu0 }
  0xd6   :  { %v268_v61 = vadd.f32 %v267_v59, %v2264_v57 }
  0xd8   :  { %v292_v10 = vsel %vm273_vm1, %v268_v61, -inf }
  0xd9   :  { %293 = vmax.xlane.f32.xlu0 %v292_v10 }
  0xda   :  { %116 = vrot.lane.b32.xlu1 %v2273_v0, %s1998_s27 }
  0xdd   :  { %v270_v12 = vpop.f32.mrf.mxu0 }
  0xde   :  { %v271_v15 = vadd.f32 %v270_v12, %v2284_v11 }
  0xe0   :  { %v295_v16 = vsel %vm273_vm1, %v271_v15, -inf }
  0xe1   :  { %296 = vmax.xlane.f32.xlu2 %v295_v16 }
  0xe2   :  { %140 = vrot.lane.b32.xlu1 %v2273_v0, %s1997_s26 }
  0xea   :  { %118 = vrot.lane.b32.xlu1 %v2293_v18, %s1998_s27 }
  0xed   :  { %92 = vrot.lane.b32.xlu0 %v2273_v0, %s1996_s25 }
  0xf9   :  { %94 = vrot.lane.b32.xlu2 %v2293_v18, %s1996_s25 }
 0x11c   :  { %v276_v23 = vpop.xlane.xlu0 %275 }
 0x11d   :  { %v298_v24 = vsub.f32 %v2198_v17, %v276_v23 }
 0x11f   :  { %v306_v25 = vmul.f32 1.442695, %v298_v24 }
 0x121   :  { %1835 = vpow2.f32 %v306_v25 }
 0x124   :  { %v279_v26 = vpop.xlane.xlu0 %278 }
 0x125   :  { %v299_v27 = vsub.f32 %v2208_v22, %v279_v26  ;;  %v2316_v22 = vpop.permute.xlu2 %114 }
 0x127   :  { %v2307_v30 = vpop.eup %1835  ;;  %v308_v31 = vmul.f32 1.442695, %v299_v27 }
 0x128   :  { %v322_v33 = vsel %vm273_vm1, %v2307_v30, 0.0 }
 0x129   :  { %1837 = vpow2.f32 %v308_v31  ;;  %323 = vadd.xlane.f32.xlu1 %v322_v33 }
 0x12c   :  { %v282_v34 = vpop.xlane.xlu1 %281 }
 0x12d   :  { %v300_v35 = vsub.f32 %v2223_v32, %v282_v34 }
 0x12f   :  { %v2312_v36 = vpop.eup %1837  ;;  %v310_v37 = vmul.f32 1.442695, %v300_v35 }
 0x130   :  { %v325_v17 = vsel %vm273_vm1, %v2312_v36, 0.0 }
 0x131   :  { %1839 = vpow2.f32 %v310_v37  ;;  %326 = vadd.xlane.f32.xlu0 %v325_v17 }
 0x134   :  { %v285_v39 = vpop.xlane.xlu1 %284 }
 0x135   :  { %v301_v40 = vsub.f32 %v259_v44, %v285_v39 }
 0x137   :  { %v2318_v42 = vpop.eup %1839  ;;  %v312_v43 = vmul.f32 1.442695, %v301_v40 }
 0x138   :  { %v328_v45 = vsel %vm273_vm1, %v2318_v42, 0.0 }
 0x139   :  { %1841 = vpow2.f32 %v312_v43  ;;  %329 = vadd.xlane.f32.xlu0 %v328_v45 }
 0x13c   :  { %v288_v32 = vpop.xlane.xlu2 %287 }
 0x13d   :  { %v302_v47 = vsub.f32 %v262_v50, %v288_v32 }
 0x13f   :  { %v2322_v49 = vpop.eup %1841  ;;  %v314_v51 = vmul.f32 1.442695, %v302_v47 }
 0x140   :  { %v331_v53 = vsel %vm273_vm1, %v2322_v49, 0.0 }
 0x141   :  { %1843 = vpow2.f32 %v314_v51  ;;  %332 = vadd.xlane.f32.xlu2 %v331_v53 }
 0x142   :  { %142 = vrot.lane.b32.xlu1 %v2293_v18, %s1997_s26 }
 0x144   :  { %v291_v56 = vpop.xlane.xlu2 %290 }
 0x145   :  { %v303_v23 = vsub.f32 %v2257_v55, %v291_v56 }
 0x147   :  { %v2328_v44 = vpop.eup %1843  ;;  %v316_v24 = vmul.f32 1.442695, %v303_v23 }
 0x148   :  { %v334_v54 = vsel %vm273_vm1, %v2328_v44, 0.0 }
 0x149   :  { %335 = vadd.xlane.f32.xlu0 %v334_v54  ;;  %v181_v54 = vld [vmem:[%s2886_s2] sm:$0xff] }
 0x14c   :  { %v294_v58 = vpop.xlane.xlu0 %293  ;;  %v117_v63 = vpop.permute.xlu1 %116 }
 0x14d   :  { %v304_v50 = vsub.f32 %v268_v61, %v294_v58 }
 0x14f   :  { %v318_v59 = vmul.f32 1.442695, %v304_v50 }
 0x151   :  { %1845 = vpow2.f32 %v318_v59 }
 0x154   :  { %v297_v60 = vpop.xlane.xlu2 %296  ;;  %v141_v61 = vpop.permute.xlu1 %140 }
 0x155   :  { %v305_v62 = vsub.f32 %v271_v15, %v297_v60 }
 0x157   :  { %v2332_v10 = vpop.eup %1845  ;;  %v320_v12 = vmul.f32 1.442695, %v305_v62 }
 0x158   :  { %v340_v16 = vsel %vm273_vm1, %v2332_v10, 0.0 }
 0x159   :  { %1847 = vpow2.f32 %v320_v12  ;;  %341 = vadd.xlane.f32.xlu2 %v340_v16  ;;  %v2370_v12 = vmul.f32 %v181_v54, %v2220_v29 }
 0x15a   :  { %1849 = vpow2.f32 %v316_v24 }
 0x15c   :  { %v2362_v35 = vpop.permute.xlu1 %118  ;;  %v2367_v56 = vpop.permute.xlu2 %94 }
 0x15f   :  { %v2337_v25 = vpop.eup %1847  ;;  %v93_v26 = vpop.permute.xlu0 %92 }
 0x160   :  { %v160_v27 = vsel %vm154_vm2, %v2273_v0, %v93_v26  ;;  %v343_v15 = vsel %vm273_vm1, %v2337_v25, 0.0  ;;  %v2347_v34 = vpop.eup %1849  ;;  %v2354_v0 = vld [vmem:[%s2885_s1 + $0x38] sm:$0xff] }
 0x161   :  { %344 = vadd.xlane.f32.xlu0 %v343_v15  ;;  %v169_v31 = vsel %vm163_vm3, %v160_v27, %v117_v63  ;;  %v337_v55 = vsel %vm273_vm1, %v2347_v34, 0.0 }
 0x162   :  { %v2345_v33 = vsel %vm172_vm4, %v169_v31, %v141_v61  ;;  %v182_v31 = vld [vmem:[%s2886_s2 + $0x8] sm:$0xff] }
 0x16c   :  { %338 = vadd.xlane.f32.xlu1 %v337_v55 }
 0x171   :  { %144 = vrot.lane.b32.xlu2 %v2354_v0, %s1997_s26 }
 0x175   :  { %96 = vrot.lane.b32.xlu0 %v2354_v0, %s1996_s25 }
 0x185   :  { %120 = vrot.lane.b32.xlu1 %v2354_v0, %s1998_s27 }
 0x19c   :  { %v324_v37 = vpop.xlane.xlu1 %323 }
 0x19d   :  { %1851 = vrcp.f32 %v324_v37  ;;  %v357_v32 = vand.u32 2147483648, %v324_v37  ;;  %v355_v47 = vand.u32 2147483647, %v324_v37  ;;  %vm351_vm6 = vweird.f32 %v324_v37 }
 0x19f   :  { %v358_v58 = vor.u32 1.1754944e-38, %v357_v32  ;;  %vm356_vm8 = vcmp.eq.f32.partialorder %v355_v47, 8.507059e+37 }
 0x1a3   :  { %v1852_v17 = vpop.eup %1851 }
 0x1a4   :  { %v347_v39 = vmul.f32 %v1852_v17, %v324_v37  ;;  %v327_v40 = vpop.xlane.xlu0 %326  ;;  %vm352_vm5 = vweird.f32 %v1852_v17 }
 0x1a5   :  { %1853 = vrcp.f32 %v327_v40  ;;  %vm353_vm7 = vmor %vm351_vm6, %vm352_vm5  ;;  %v372_v24 = vand.u32 2147483648, %v327_v40  ;;  %v370_v26 = vand.u32 2147483647, %v327_v40  ;;  %vm366_vm10 = vweird.f32 %v327_v40 }
 0x1a6   :  { %v348_v43 = vsub.f32 1.0, %v347_v39 }
 0x1a7   :  { %v373_v29 = vor.u32 1.1754944e-38, %v372_v24  ;;  %vm371_vm12 = vcmp.eq.f32.partialorder %v370_v26, 8.507059e+37 }
 0x1a8   :  { %v349_v45 = vmul.f32 %v1852_v17, %v348_v43  ;;  %v2379_v43 = vmul.f32 %v182_v31, %v2236_v41 }
 0x1aa   :  { %v350_v51 = vadd.f32 %v1852_v17, %v349_v45 }
 0x1ab   :  { %v1854_v53 = vpop.eup %1853 }
 0x1ac   :  { %v362_v50 = vmul.f32 %v1854_v53, %v327_v40  ;;  %v330_v59 = vpop.xlane.xlu0 %329  ;;  %v354_v60 = vsel %vm353_vm7, %v1852_v17, %v350_v51  ;;  %vm367_vm9 = vweird.f32 %v1854_v53 }
 0x1ad   :  { %1855 = vrcp.f32 %v330_v59  ;;  %v359_v63 = vsel %vm356_vm8, %v358_v58, %v354_v60  ;;  %vm368_vm11 = vmor %vm366_vm10, %vm367_vm9  ;;  %v387_v32 = vand.u32 2147483648, %v330_v59  ;;  %v385_v47 = vand.u32 2147483647, %v330_v59 }
 0x1ae   :  { %v363_v62 = vsub.f32 1.0, %v362_v50  ;;  %v360_v16 = vmul.f32 %v2307_v30, %v359_v63  ;;  %vm381_vm14 = vweird.f32 %v330_v59 }
 0x1af   :  { %v388_v41 = vor.u32 1.1754944e-38, %v387_v32  ;;  %vm386_vm5 = vcmp.eq.f32.partialorder %v385_v47, 8.507059e+37 }
 0x1b0   :  { %v364_v23 = vmul.f32 %v1854_v53, %v363_v62  ;;  %v466_v61 = vsub.f32 %v2370_v12, %v360_v16 }
 0x1b2   :  { %v365_v27 = vadd.f32 %v1854_v53, %v364_v23  ;;  %1723 = vmatmul.msk.f32.vlgmr.msra.gmra.mxu1 %vm273_vm1, %v466_v61 }
 0x1b3   :  { %v1856_v15 = vpop.eup %1855 }
 0x1b4   :  { %v377_v55 = vmul.f32 %v1856_v15, %v330_v59  ;;  %v333_v37 = vpop.xlane.xlu2 %332  ;;  %v369_v30 = vsel %vm368_vm11, %v1854_v53, %v365_v27  ;;  %vm382_vm13 = vweird.f32 %v1856_v15  ;;  %v183_v53 = vld [vmem:[%s2886_s2 + $0x10] sm:$0xff] }
 0x1b5   :  { %1857 = vrcp.f32 %v333_v37  ;;  %v374_v39 = vsel %vm371_vm12, %v373_v29, %v369_v30  ;;  %vm383_vm15 = vmor %vm381_vm14, %vm382_vm13  ;;  %v2388_v16 = vmul.f32 %v183_v53, %v2247_v48  ;;  %v402_v59 = vand.u32 2147483648, %v333_v37 }
 0x1b6   :  { %v378_v17 = vsub.f32 1.0, %v377_v55  ;;  %v375_v40 = vmul.f32 %v2312_v36, %v374_v39  ;;  %v400_v26 = vand.u32 2147483647, %v333_v37  ;;  %vm396_vm7 = vweird.f32 %v333_v37 }
 0x1b7   :  { %v403_v29 = vor.u32 1.1754944e-38, %v402_v59  ;;  %v159_v30 = vsel %vm154_vm2, %v2170_v13, %v2301_v20  ;;  %v185_v13 = vld [vmem:[%s2886_s2 + $0x20] sm:$0xff] }
 0x1b8   :  { %v379_v45 = vmul.f32 %v1856_v15, %v378_v17  ;;  %v467_v51 = vsub.f32 %v2379_v43, %v375_v40  ;;  %vm401_vm9 = vcmp.eq.f32.partialorder %v400_v26, 8.507059e+37  ;;  %v168_v47 = vsel %vm163_vm3, %v159_v30, %v2316_v22 }
 0x1ba   :  { %v380_v54 = vadd.f32 %v1856_v15, %v379_v45  ;;  %1724 = vmatmul.msk.f32.gmra.mxu1 %vm273_vm1, %v467_v51 }
 0x1bb   :  { %v1858_v58 = vpop.eup %1857 }
 0x1bc   :  { %v392_v50 = vmul.f32 %v1858_v58, %v333_v37  ;;  %v336_v60 = vpop.xlane.xlu0 %335  ;;  %v384_v36 = vsel %vm383_vm15, %v1856_v15, %v380_v54  ;;  %vm397_vm6 = vweird.f32 %v1858_v58  ;;  %v184_v15 = vld [vmem:[%s2886_s2 + $0x18] sm:$0xff] }
 0x1bd   :  { %1859 = vrcp.f32 %v336_v60  ;;  %v389_v63 = vsel %vm386_vm5, %v388_v41, %v384_v36  ;;  %vm398_vm8 = vmor %vm396_vm7, %vm397_vm6  ;;  %v2400_v17 = vmul.f32 %v184_v15, %v2276_v9  ;;  %v417_v45 = vand.u32 2147483648, %v336_v60 }
 0x1be   :  { %v393_v62 = vsub.f32 1.0, %v392_v50  ;;  %v390_v23 = vmul.f32 %v2318_v42, %v389_v63  ;;  %v415_v51 = vand.u32 2147483647, %v336_v60  ;;  %vm411_vm11 = vweird.f32 %v336_v60 }
 0x1bf   :  { %v177_v9 = vsel %vm172_vm4, %v168_v47, %v2303_v21  ;;  %v418_v20 = vor.u32 1.1754944e-38, %v417_v45 }
 0x1c0   :  { %v394_v24 = vmul.f32 %v1858_v58, %v393_v62  ;;  %v468_v61 = vsub.f32 %v2388_v16, %v390_v23  ;;  %vm416_vm13 = vcmp.eq.f32.partialorder %v415_v51, 8.507059e+37  ;;  %v2412_v53 = vmul.f32 %v185_v13, %v177_v9 }
 0x1c1   :  { %v161_v13 = vsel %vm154_vm2, %v2293_v18, %v2367_v56 }
 0x1c2   :  { %v395_v27 = vadd.f32 %v1858_v58, %v394_v24  ;;  %1725 = vmatmul.msk.f32.gmra.mxu1 %vm273_vm1, %v468_v61 }
 0x1c3   :  { %v1860_v31 = vpop.eup %1859 }
 0x1c4   :  { %v407_v48 = vmul.f32 %v1860_v31, %v336_v60  ;;  %v399_v55 = vsel %vm398_vm8, %v1858_v58, %v395_v27  ;;  %vm412_vm10 = vweird.f32 %v1860_v31  ;;  %v143_v60 = vpop.permute.xlu1 %142 }
 0x1c5   :  { %v404_v42 = vsel %vm401_vm9, %v403_v29, %v399_v55  ;;  %vm413_vm12 = vmor %vm411_vm11, %vm412_vm10 }
 0x1c6   :  { %v408_v37 = vsub.f32 1.0, %v407_v48  ;;  %v405_v39 = vmul.f32 %v2322_v49, %v404_v42  ;;  %v186_v42 = vld [vmem:[%s2886_s2 + $0x28] sm:$0xff] }
 0x1c7   :  { %v2425_v47 = vmul.f32 %v186_v42, %v2345_v33  ;;  %v187_v33 = vld [vmem:[%s2886_s2 + $0x30] sm:$0xff] }
 0x1c8   :  { %v409_v40 = vmul.f32 %v1860_v31, %v408_v37  ;;  %v469_v32 = vsub.f32 %v2400_v17, %v405_v39 }
 0x1ca   :  { %v410_v54 = vadd.f32 %v1860_v31, %v409_v40  ;;  %1726 = vmatmul.msk.f32.gmra.mxu1 %vm273_vm1, %v469_v32 }
 0x1cc   :  { %v414_v49 = vsel %vm413_vm12, %v1860_v31, %v410_v54  ;;  %v342_v50 = vpop.xlane.xlu2 %341 }
 0x1cd   :  { %v419_v58 = vsel %vm416_vm13, %v418_v20, %v414_v49  ;;  %1861 = vrcp.f32 %v342_v50  ;;  %vm441_vm6 = vweird.f32 %v342_v50  ;;  %v447_v30 = vand.u32 2147483648, %v342_v50 }
 0x1ce   :  { %v420_v22 = vmul.f32 %v2328_v44, %v419_v58  ;;  %v445_v39 = vand.u32 2147483647, %v342_v50 }
 0x1cf   :  { %v448_v9 = vor.u32 1.1754944e-38, %v447_v30 }
 0x1d0   :  { %v470_v41 = vsub.f32 %v2412_v53, %v420_v22  ;;  %vm446_vm10 = vcmp.eq.f32.partialorder %v445_v39, 8.507059e+37 }
 0x1d2   :  { %1727 = vmatmul.msk.f32.gmra.mxu1 %vm273_vm1, %v470_v41  ;;  %v170_v41 = vsel %vm163_vm3, %v161_v13, %v2362_v35 }
 0x1d3   :  { %v1862_v36 = vpop.eup %1861 }
 0x1d4   :  { %v2417_v62 = vpop.xlane.xlu0 %344  ;;  %v437_v21 = vmul.f32 %v1862_v36, %v342_v50  ;;  %vm442_vm15 = vweird.f32 %v1862_v36 }
 0x1d5   :  { %vm443_vm9 = vmor %vm441_vm6, %vm442_vm15  ;;  %vm456_vm12 = vweird.f32 %v2417_v62  ;;  %v460_v35 = vand.u32 2147483647, %v2417_v62 }
 0x1d6   :  { %v438_v59 = vsub.f32 1.0, %v437_v21 }
 0x1d8   :  { %v439_v44 = vmul.f32 %v1862_v36, %v438_v59 }
 0x1da   :  { %v440_v48 = vadd.f32 %v1862_v36, %v439_v44 }
 0x1dc   :  { %v444_v54 = vsel %vm443_vm9, %v1862_v36, %v440_v48 }
 0x1dd   :  { %v449_v22 = vsel %vm446_vm10, %v448_v9, %v444_v54 }
 0x1de   :  { %v450_v36 = vmul.f32 %v2332_v10, %v449_v22  ;;  %v188_v10 = vld [vmem:[%s2886_s2 + $0x38] sm:$0xff] }
 0x1df   :  { %v339_v63 = vpop.xlane.xlu1 %338 }
 0x1e0   :  { %1863 = vrcp.f32 %v339_v63  ;;  %v432_v27 = vand.u32 2147483648, %v339_v63  ;;  %v430_v29 = vand.u32 2147483647, %v339_v63  ;;  %vm426_vm5 = vweird.f32 %v339_v63 }
 0x1e1   :  { %1865 = vrcp.f32 %v2417_v62 }
 0x1e2   :  { %v433_v37 = vor.u32 1.1754944e-38, %v432_v27  ;;  %vm431_vm8 = vcmp.eq.f32.partialorder %v430_v29, 8.507059e+37 }
 0x1e6   :  { %v1864_v23 = vpop.eup %1863 }
 0x1e7   :  { %v422_v24 = vmul.f32 %v1864_v23, %v339_v63  ;;  %v1866_v26 = vpop.eup %1865  ;;  %vm427_vm14 = vweird.f32 %v1864_v23  ;;  %v97_v58 = vpop.permute.xlu0 %96  ;;  %v462_v63 = vand.u32 2147483648, %v2417_v62 }
 0x1e8   :  { %v452_v31 = vmul.f32 %v1866_v26, %v2417_v62  ;;  %vm428_vm7 = vmor %vm426_vm5, %vm427_vm14  ;;  %v162_v18 = vsel %vm154_vm2, %v2354_v0, %v97_v58  ;;  %vm457_vm11 = vweird.f32 %v1866_v26  ;;  %vm461_vm2 = vcmp.eq.f32.partialorder %v460_v35, 8.507059e+37 }
 0x1e9   :  { %v423_v61 = vsub.f32 1.0, %v422_v24  ;;  %vm458_vm13 = vmor %vm456_vm12, %vm457_vm11  ;;  %v463_v24 = vor.u32 1.1754944e-38, %v462_v63 }
 0x1ea   :  { %v453_v40 = vsub.f32 1.0, %v452_v31 }
 0x1eb   :  { %v424_v15 = vmul.f32 %v1864_v23, %v423_v61 }
 0x1ec   :  { %v454_v20 = vmul.f32 %v1866_v26, %v453_v40 }
 0x1ed   :  { %v425_v55 = vadd.f32 %v1864_v23, %v424_v15 }
 0x1ee   :  { %v455_v56 = vadd.f32 %v1866_v26, %v454_v20 }
 0x1ef   :  { %v429_v45 = vsel %vm428_vm7, %v1864_v23, %v425_v55  ;;  %v145_v23 = vpop.permute.xlu2 %144 }
 0x1f0   :  { %v434_v32 = vsel %vm431_vm8, %v433_v37, %v429_v45  ;;  %v459_v0 = vsel %vm458_vm13, %v1866_v26, %v455_v56  ;;  %v205_v26 = vld [vmem:[#allocation3] sm:$0xff] }
 0x1f1   :  { %v435_v51 = vmul.f32 %v2347_v34, %v434_v32  ;;  %v179_v34 = vsel %vm172_vm4, %v170_v41, %v143_v60  ;;  %v464_v61 = vsel %vm461_vm2, %v463_v24, %v459_v0  ;;  %589 = vmatpush.msra.mxu2 %v205_v26 }
 0x1f2   :  { %v2443_v21 = vmul.f32 %v187_v33, %v179_v34  ;;  %v465_v62 = vmul.f32 %v2337_v25, %v464_v61 }
 0x1f3   :  { %v471_v49 = vsub.f32 %v2425_v47, %v435_v51 }
 0x1f4   :  { %v472_v60 = vsub.f32 %v2443_v21, %v450_v36 }
 0x1f5   :  { %1728 = vmatmul.msk.f32.gmra.mxu1 %vm273_vm1, %v471_v49 }
 0x1f7   :  { %v121_v50 = vpop.permute.xlu1 %120 }
 0x1f8   :  { %v171_v59 = vsel %vm163_vm3, %v162_v18, %v121_v50 }
 0x1f9   :  { %v180_v44 = vsel %vm172_vm4, %v171_v59, %v145_v23 }
 0x1fa   :  { %v2454_v27 = vmul.f32 %v188_v10, %v180_v44 }
 0x1fc   :  { %v473_v31 = vsub.f32 %v2454_v27, %v465_v62 }
 0x1fd   :  { %1729 = vmatmul.msk.f32.gmra.mxu1 %vm273_vm1, %v472_v60 }
 0x205   :  { %1730 = vmatmul.msk.f32.gmra.mxu1 %vm273_vm1, %v473_v31 }
 0x22f   :  { %v515_v15 = vpop.f32.mrf.mxu1 }
 0x230   :  { %v539_v29 = vadd.f32 %v515_v15, %v2125_v8 }
 0x232   :  { %1731 = vmatmul.msk.f32.vlgmr.msra.gmra.mxu2 %vm207_vm0, %v539_v29 }
 0x237   :  { %v518_v48 = vpop.f32.mrf.mxu1 }
 0x238   :  { %v540_v55 = vadd.f32 %v518_v48, %v2117_v7 }
 0x23a   :  { %1732 = vmatmul.msk.f32.gmra.mxu2 %vm207_vm0, %v540_v55 }
 0x23f   :  { %v521_v42 = vpop.f32.mrf.mxu1 }
 0x240   :  { %v541_v30 = vadd.f32 %v521_v42, %v2111_v6 }
 0x242   :  { %1733 = vmatmul.msk.f32.gmra.mxu2 %vm207_vm0, %v541_v30 }
 0x247   :  { %v524_v25 = vpop.f32.mrf.mxu1 }
 0x248   :  { %v542_v37 = vadd.f32 %v524_v25, %v2103_v5 }
 0x24a   :  { %1734 = vmatmul.msk.f32.gmra.mxu2 %vm207_vm0, %v542_v37 }
 0x24f   :  { %v527_v39 = vpop.f32.mrf.mxu1 }
 0x250   :  { %v543_v8 = vadd.f32 %v527_v39, %v2097_v4 }
 0x252   :  { %1735 = vmatmul.msk.f32.gmra.mxu2 %vm207_vm0, %v543_v8 }
 0x272   :  { %v530_v40 = vpop.f32.mrf.mxu1 }
 0x273   :  { %v544_v7 = vadd.f32 %v530_v40, %v2089_v3  ;;  %v1832_v3 = vld [vmem:[%s2889_s5] ss:$0 sm:$0xff] }
 0x275   :  { %1736 = vmatmul.msk.f32.gmra.mxu2 %vm207_vm0, %v544_v7 }
 0x27a   :  { %v533_v45 = vpop.f32.mrf.mxu1 }
 0x27b   :  { %v545_v6 = vadd.f32 %v533_v45, %v2083_v2 }
 0x27d   :  { %1737 = vmatmul.msk.f32.gmra.mxu2 %vm207_vm0, %v545_v6 }
 0x282   :  { %v536_v32 = vpop.f32.mrf.mxu1 }
 0x283   :  { %v546_v5 = vadd.f32 %v536_v32, %v2075_v1 }
 0x285   :  { %1738 = vmatmul.msk.f32.gmra.mxu2 %vm207_vm0, %v546_v5 }
 0x2b5   :  { %v591_v51 = vpop.f32.mrf.mxu2 }
 0x2b6   :  { %v592_v59 = vadd.f32 %v1832_v3, %v591_v51 }
 0x2b8   :  { %v2504_v0 = vmax.f32 %v592_v59, 0.0 }
 0x2bd   :  { %v594_v54 = vpop.f32.mrf.mxu2 }
 0x2be   :  { %v595_v63 = vadd.f32 %v1832_v3, %v594_v54 }
 0x2c0   :  { %v2501_v60 = vmax.f32 %v595_v63, 0.0 }
 0x2c5   :  { %v597_v4 = vpop.f32.mrf.mxu2 }
 0x2c6   :  { %v598_v50 = vadd.f32 %v1832_v3, %v597_v4 }
 0x2c8   :  { %v2496_v23 = vmax.f32 %v598_v50, 0.0 }
 0x2cd   :  { %v600_v13 = vpop.f32.mrf.mxu2 }
 0x2ce   :  { %v601_v18 = vadd.f32 %v1832_v3, %v600_v13 }
 0x2d0   :  { %v2493_v35 = vmax.f32 %v601_v18, 0.0 }
 0x2d5   :  { %v603_v9 = vpop.f32.mrf.mxu2 }
 0x2d6   :  { %v604_v1 = vadd.f32 %v1832_v3, %v603_v9 }
 0x2d8   :  { %v2488_v36 = vmax.f32 %v604_v1, 0.0 }
 0x2f8   :  { %v606_v20 = vpop.f32.mrf.mxu2 }
 0x2f9   :  { %v607_v41 = vadd.f32 %v1832_v3, %v606_v20 }
 0x2fb   :  { %v2485_v56 = vmax.f32 %v607_v41, 0.0 }
 0x300   :  { %v609_v49 = vpop.f32.mrf.mxu2 }
 0x301   :  { %v610_v2 = vadd.f32 %v1832_v3, %v609_v49 }
 0x303   :  { %v2480_v34 = vmax.f32 %v610_v2, 0.0 }
 0x308   :  { %v612_v58 = vpop.f32.mrf.mxu2 }
 0x309   :  { %v613_v22 = vadd.f32 %v1832_v3, %v612_v58 }
 0x30b   :  { %v2478_v33 = vmax.f32 %v613_v22, 0.0 }
 0x30d   :  { %1739 = vmatpush.xpose.msk.msra.mxu3 %vm163_vm3, %v2478_v33  ;;  %925 = vmatpush.msrb.mxu2 %v2478_v33 }
 0x30f   :  { %926 = vmatpush.msrb.mxu2 %v2480_v34 }
 0x311   :  { %1740 = vmatpush.xpose.msk.msra.mxu3 %vm163_vm3, %v2480_v34  ;;  %927 = vmatpush.msrb.mxu2 %v2485_v56 }
 0x313   :  { %928 = vmatpush.msrb.mxu2 %v2488_v36 }
 0x315   :  { %1741 = vmatpush.xpose.msk.msra.mxu3 %vm163_vm3, %v2485_v56  ;;  %929 = vmatpush.msrb.mxu2 %v2493_v35 }
 0x317   :  { %930 = vmatpush.msrb.mxu2 %v2496_v23 }
 0x319   :  { %1742 = vmatpush.xpose.msk.msra.mxu3 %vm163_vm3, %v2488_v36  ;;  %931 = vmatpush.msrb.mxu2 %v2501_v60 }
 0x31b   :  { %932 = vmatpush.msrb.mxu2 %v2504_v0 }
 0x31d   :  { %1743 = vmatpush.xpose.msk.msra.mxu3 %vm163_vm3, %v2493_v35 }
 0x321   :  { %1744 = vmatpush.xpose.msk.msra.mxu3 %vm163_vm3, %v2496_v23 }
 0x325   :  { %1745 = vmatpush.xpose.msk.msra.mxu3 %vm163_vm3, %v2501_v60 }
 0x329   :  { %1746 = vmatpush.xpose.msk.msra.mxu3 %vm163_vm3, %v2504_v0 }
 0x32c   :  { %1747 = vmatmul.msk.f32.vlgmr.msra.gmra.mxu3 %vm163_vm3, %v2504_v0 }
 0x334   :  { %1748 = vmatmul.msk.f32.gmra.mxu3 %vm163_vm3, %v2501_v60 }
 0x33c   :  { %1749 = vmatmul.msk.f32.gmra.mxu3 %vm163_vm3, %v2496_v23 }
 0x344   :  { %1750 = vmatmul.msk.f32.gmra.mxu3 %vm163_vm3, %v2493_v35 }
 0x34c   :  { %1751 = vmatmul.msk.f32.gmra.mxu3 %vm163_vm3, %v2488_v36 }
 0x354   :  { %1752 = vmatmul.msk.f32.gmra.mxu3 %vm163_vm3, %v2485_v56 }
 0x35c   :  { %1753 = vmatmul.msk.f32.gmra.mxu3 %vm163_vm3, %v2480_v34 }
 0x364   :  { %1754 = vmatmul.msk.f32.gmra.mxu3 %vm163_vm3, %v2478_v33 }
 0x3af   :  { %v669_v24 = vpop.f32.mrf.mxu3 }
 0x3b0   :  { %v670_v10 = vadd.f32 %v669_v24, %v2195_v14 }
 0x3b2   :  { %v693_v44 = vsel %vm273_vm1, %v670_v10, -inf }
 0x3b3   :  { %694 = vmax.xlane.f32.xlu1 %v693_v44 }
 0x3b7   :  { %v672_v61 = vpop.f32.mrf.mxu3 }
 0x3b8   :  { %v673_v62 = vadd.f32 %v672_v61, %v2205_v19 }
 0x3ba   :  { %v696_v31 = vsel %vm273_vm1, %v673_v62, -inf }
 0x3bb   :  { %697 = vmax.xlane.f32.xlu2 %v696_v31 }
 0x3bf   :  { %v675_v26 = vpop.f32.mrf.mxu3 }
 0x3c0   :  { %v676_v15 = vadd.f32 %v675_v26, %v2217_v28 }
 0x3c2   :  { %v699_v29 = vsel %vm273_vm1, %v676_v15, -inf }
 0x3c3   :  { %700 = vmax.xlane.f32.xlu0 %v699_v29 }
 0x3c7   :  { %v678_v48 = vpop.f32.mrf.mxu3 }
 0x3c8   :  { %v679_v55 = vadd.f32 %v678_v48, %v2232_v38 }
 0x3ca   :  { %v702_v14 = vsel %vm273_vm1, %v679_v55, -inf }
 0x3cb   :  { %703 = vmax.xlane.f32.xlu1 %v702_v14 }
 0x3cf   :  { %v681_v42 = vpop.f32.mrf.mxu3 }
 0x3d0   :  { %v682_v30 = vadd.f32 %v681_v42, %v2244_v46 }
 0x3d2   :  { %v705_v19 = vsel %vm273_vm1, %v682_v30, -inf }
 0x3d3   :  { %706 = vmax.xlane.f32.xlu2 %v705_v19 }
 0x3d7   :  { %v684_v25 = vpop.f32.mrf.mxu3 }
 0x3d8   :  { %v685_v37 = vadd.f32 %v684_v25, %v2254_v52 }
 0x3da   :  { %v708_v28 = vsel %vm273_vm1, %v685_v37, -inf }
 0x3db   :  { %709 = vmax.xlane.f32.xlu1 %v708_v28 }
 0x3df   :  { %v687_v39 = vpop.f32.mrf.mxu3 }
 0x3e0   :  { %v688_v8 = vadd.f32 %v687_v39, %v2264_v57 }
 0x3e2   :  { %v711_v38 = vsel %vm273_vm1, %v688_v8, -inf }
 0x3e3   :  { %712 = vmax.xlane.f32.xlu0 %v711_v38 }
 0x3e7   :  { %v690_v40 = vpop.f32.mrf.mxu3 }
 0x3e8   :  { %v691_v7 = vadd.f32 %v690_v40, %v2284_v11 }
 0x3ea   :  { %v714_v46 = vsel %vm273_vm1, %v691_v7, -inf }
 0x3eb   :  { %715 = vmax.xlane.f32.xlu1 %v714_v46 }
 0x426   :  { %v695_v45 = vpop.xlane.xlu1 %694 }
 0x427   :  { %v717_v6 = vsub.f32 %v670_v10, %v695_v45 }
 0x429   :  { %v725_v32 = vmul.f32 1.442695, %v717_v6 }
 0x42b   :  { %1867 = vpow2.f32 %v725_v32 }
 0x42e   :  { %v698_v52 = vpop.xlane.xlu2 %697 }
 0x42f   :  { %v718_v5 = vsub.f32 %v673_v62, %v698_v52 }
 0x431   :  { %v2550_v51 = vpop.eup %1867  ;;  %v727_v54 = vmul.f32 1.442695, %v718_v5 }
 0x432   :  { %v741_v57 = vsel %vm273_vm1, %v2550_v51, 0.0 }
 0x433   :  { %1869 = vpow2.f32 %v727_v54  ;;  %742 = vadd.xlane.f32.xlu2 %v741_v57 }
 0x436   :  { %v701_v4 = vpop.xlane.xlu0 %700 }
 0x437   :  { %v719_v13 = vsub.f32 %v676_v15, %v701_v4 }
 0x439   :  { %v2554_v11 = vpop.eup %1869  ;;  %v729_v9 = vmul.f32 1.442695, %v719_v13 }
 0x43a   :  { %v744_v20 = vsel %vm273_vm1, %v2554_v11, 0.0 }
 0x43b   :  { %1871 = vpow2.f32 %v729_v9  ;;  %745 = vadd.xlane.f32.xlu0 %v744_v20 }
 0x43e   :  { %v704_v49 = vpop.xlane.xlu1 %703 }
 0x43f   :  { %v720_v3 = vsub.f32 %v679_v55, %v704_v49 }
 0x441   :  { %v2558_v58 = vpop.eup %1871  ;;  %v731_v2 = vmul.f32 1.442695, %v720_v3 }
 0x442   :  { %v747_v22 = vsel %vm273_vm1, %v2558_v58, 0.0 }
 0x443   :  { %1873 = vpow2.f32 %v731_v2  ;;  %748 = vadd.xlane.f32.xlu2 %v747_v22 }
 0x446   :  { %v707_v41 = vpop.xlane.xlu2 %706 }
 0x447   :  { %v721_v1 = vsub.f32 %v682_v30, %v707_v41 }
 0x449   :  { %v2562_v18 = vpop.eup %1873  ;;  %v733_v50 = vmul.f32 1.442695, %v721_v1 }
 0x44a   :  { %v750_v63 = vsel %vm273_vm1, %v2562_v18, 0.0 }
 0x44b   :  { %1875 = vpow2.f32 %v733_v50  ;;  %751 = vadd.xlane.f32.xlu1 %v750_v63 }
 0x44e   :  { %v710_v59 = vpop.xlane.xlu1 %709 }
 0x44f   :  { %v722_v24 = vsub.f32 %v685_v37, %v710_v59 }
 0x451   :  { %v2566_v10 = vpop.eup %1875  ;;  %v735_v44 = vmul.f32 1.442695, %v722_v24 }
 0x452   :  { %v753_v61 = vsel %vm273_vm1, %v2566_v10, 0.0 }
 0x453   :  { %1877 = vpow2.f32 %v735_v44  ;;  %754 = vadd.xlane.f32.xlu0 %v753_v61 }
 0x456   :  { %v713_v62 = vpop.xlane.xlu0 %712 }
 0x457   :  { %v723_v31 = vsub.f32 %v688_v8, %v713_v62 }
 0x459   :  { %v2570_v26 = vpop.eup %1877  ;;  %v737_v15 = vmul.f32 1.442695, %v723_v31 }
 0x45a   :  { %v756_v29 = vsel %vm273_vm1, %v2570_v26, 0.0 }
 0x45b   :  { %1879 = vpow2.f32 %v737_v15  ;;  %757 = vadd.xlane.f32.xlu2 %v756_v29 }
 0x45e   :  { %v716_v48 = vpop.xlane.xlu1 %715 }
 0x45f   :  { %v724_v55 = vsub.f32 %v691_v7, %v716_v48 }
 0x461   :  { %v2574_v14 = vpop.eup %1879  ;;  %v739_v42 = vmul.f32 1.442695, %v724_v55 }
 0x462   :  { %v759_v30 = vsel %vm273_vm1, %v2574_v14, 0.0 }
 0x463   :  { %1881 = vpow2.f32 %v739_v42  ;;  %760 = vadd.xlane.f32.xlu1 %v759_v30 }
 0x469   :  { %v2578_v19 = vpop.eup %1881 }
 0x46a   :  { %v762_v25 = vsel %vm273_vm1, %v2578_v19, 0.0 }
 0x46b   :  { %763 = vadd.xlane.f32.xlu0 %v762_v25 }
 0x4a6   :  { %v743_v37 = vpop.xlane.xlu2 %742 }
 0x4a7   :  { %1883 = vrcp.f32 %v743_v37  ;;  %v776_v7 = vand.u32 2147483648, %v743_v37  ;;  %v774_v46 = vand.u32 2147483647, %v743_v37  ;;  %vm770_vm4 = vweird.f32 %v743_v37 }
 0x4a9   :  { %v777_v52 = vor.u32 1.1754944e-38, %v776_v7  ;;  %vm775_vm15 = vcmp.eq.f32.partialorder %v774_v46, 8.507059e+37 }
 0x4ad   :  { %v1884_v28 = vpop.eup %1883 }
 0x4ae   :  { %v766_v39 = vmul.f32 %v1884_v28, %v743_v37  ;;  %v746_v8 = vpop.xlane.xlu0 %745  ;;  %vm771_vm0 = vweird.f32 %v1884_v28 }
 0x4af   :  { %1885 = vrcp.f32 %v746_v8  ;;  %vm772_vm14 = vmor %vm770_vm4, %vm771_vm0  ;;  %v791_v20 = vand.u32 2147483648, %v746_v8  ;;  %v789_v49 = vand.u32 2147483647, %v746_v8  ;;  %vm785_vm6 = vweird.f32 %v746_v8 }
 0x4b0   :  { %v767_v38 = vsub.f32 1.0, %v766_v39 }
 0x4b1   :  { %v792_v41 = vor.u32 1.1754944e-38, %v791_v20  ;;  %vm790_vm8 = vcmp.eq.f32.partialorder %v789_v49, 8.507059e+37  ;;  %v626_v49 = vld [vmem:[%s2890_s6 + $0x18] sm:$0xff] }
 0x4b2   :  { %v768_v40 = vmul.f32 %v1884_v28, %v767_v38  ;;  %1005 = vmatpush.msrb.mxu1 %v626_v49  ;;  %1819 = vmatpush.msrb.mxu3 %v626_v49 }
 0x4b4   :  { %v769_v45 = vadd.f32 %v1884_v28, %v768_v40 }
 0x4b5   :  { %v1886_v6 = vpop.eup %1885 }
 0x4b6   :  { %v773_v32 = vsel %vm772_vm14, %v1884_v28, %v769_v45  ;;  %v781_v5 = vmul.f32 %v1886_v6, %v746_v8  ;;  %v749_v54 = vpop.xlane.xlu2 %748  ;;  %vm786_vm5 = vweird.f32 %v1886_v6 }
 0x4b7   :  { %1887 = vrcp.f32 %v749_v54  ;;  %v778_v4 = vsel %vm775_vm15, %v777_v52, %v773_v32  ;;  %vm787_vm7 = vmor %vm785_vm6, %vm786_vm5  ;;  %v806_v61 = vand.u32 2147483648, %v749_v54  ;;  %v804_v62 = vand.u32 2147483647, %v749_v54 }
 0x4b8   :  { %v782_v57 = vsub.f32 1.0, %v781_v5  ;;  %v779_v13 = vmul.f32 %v2550_v51, %v778_v4  ;;  %vm800_vm10 = vweird.f32 %v749_v54 }
 0x4b9   :  { %v807_v48 = vor.u32 1.1754944e-38, %v806_v61  ;;  %vm805_vm12 = vcmp.eq.f32.partialorder %v804_v62, 8.507059e+37 }
 0x4ba   :  { %v783_v9 = vmul.f32 %v1886_v6, %v782_v57  ;;  %v885_v3 = vsub.f32 %v2370_v12, %v779_v13 }
 0x4bc   :  { %v784_v2 = vadd.f32 %v1886_v6, %v783_v9  ;;  %1755 = vmatmul.msk.f32.vlgmr.msrb.gmra.mxu2 %vm273_vm1, %v885_v3 }
 0x4bd   :  { %v1888_v22 = vpop.eup %1887 }
 0x4be   :  { %v796_v1 = vmul.f32 %v1888_v22, %v749_v54  ;;  %v752_v50 = vpop.xlane.xlu1 %751  ;;  %v788_v63 = vsel %vm787_vm7, %v1886_v6, %v784_v2  ;;  %vm801_vm9 = vweird.f32 %v1888_v22 }
 0x4bf   :  { %1889 = vrcp.f32 %v752_v50  ;;  %v793_v51 = vsel %vm790_vm8, %v792_v41, %v788_v63  ;;  %vm802_vm11 = vmor %vm800_vm10, %vm801_vm9  ;;  %v821_v39 = vand.u32 2147483648, %v752_v50  ;;  %v819_v8 = vand.u32 2147483647, %v752_v50 }
 0x4c0   :  { %v797_v59 = vsub.f32 1.0, %v796_v1  ;;  %v794_v24 = vmul.f32 %v2554_v11, %v793_v51  ;;  %vm815_vm2 = vweird.f32 %v752_v50 }
 0x4c1   :  { %v822_v46 = vor.u32 1.1754944e-38, %v821_v39  ;;  %vm820_vm4 = vcmp.eq.f32.partialorder %v819_v8, 8.507059e+37 }
 0x4c2   :  { %v798_v44 = vmul.f32 %v1888_v22, %v797_v59  ;;  %v886_v31 = vsub.f32 %v2379_v43, %v794_v24 }
 0x4c4   :  { %v799_v15 = vadd.f32 %v1888_v22, %v798_v44  ;;  %1756 = vmatmul.msk.f32.gmra.mxu2 %vm273_vm1, %v886_v31 }
 0x4c5   :  { %v1890_v29 = vpop.eup %1889 }
 0x4c6   :  { %v811_v55 = vmul.f32 %v1890_v29, %v752_v50  ;;  %v755_v42 = vpop.xlane.xlu0 %754  ;;  %v803_v30 = vsel %vm802_vm11, %v1888_v22, %v799_v15  ;;  %vm816_vm13 = vweird.f32 %v1890_v29 }
 0x4c7   :  { %1891 = vrcp.f32 %v755_v42  ;;  %v808_v11 = vsel %vm805_vm12, %v807_v48, %v803_v30  ;;  %vm817_vm0 = vmor %vm815_vm2, %vm816_vm13  ;;  %v836_v57 = vand.u32 2147483648, %v755_v42  ;;  %v834_v4 = vand.u32 2147483647, %v755_v42 }
 0x4c8   :  { %v812_v25 = vsub.f32 1.0, %v811_v55  ;;  %v809_v37 = vmul.f32 %v2558_v58, %v808_v11  ;;  %vm830_vm15 = vweird.f32 %v755_v42 }
 0x4c9   :  { %v837_v3 = vor.u32 1.1754944e-38, %v836_v57  ;;  %vm835_vm6 = vcmp.eq.f32.partialorder %v834_v4, 8.507059e+37 }
 0x4ca   :  { %v813_v28 = vmul.f32 %v1890_v29, %v812_v25  ;;  %v887_v38 = vsub.f32 %v2388_v16, %v809_v37 }
 0x4cc   :  { %v814_v40 = vadd.f32 %v1890_v29, %v813_v28  ;;  %1757 = vmatmul.msk.f32.gmra.mxu2 %vm273_vm1, %v887_v38 }
 0x4cd   :  { %v1892_v7 = vpop.eup %1891 }
 0x4ce   :  { %v826_v45 = vmul.f32 %v1892_v7, %v755_v42  ;;  %v758_v6 = vpop.xlane.xlu2 %757  ;;  %v818_v32 = vsel %vm817_vm0, %v1890_v29, %v814_v40  ;;  %vm831_vm14 = vweird.f32 %v1892_v7 }
 0x4cf   :  { %1893 = vrcp.f32 %v758_v6  ;;  %v823_v58 = vsel %vm820_vm4, %v822_v46, %v818_v32  ;;  %vm832_vm5 = vmor %vm830_vm15, %vm831_vm14  ;;  %v851_v51 = vand.u32 2147483648, %v758_v6  ;;  %v849_v24 = vand.u32 2147483647, %v758_v6 }
 0x4d0   :  { %v827_v52 = vsub.f32 1.0, %v826_v45  ;;  %v824_v5 = vmul.f32 %v2562_v18, %v823_v58  ;;  %v625_v18 = vld [vmem:[%s2890_s6 + $0x10] sm:$0xff]  ;;  %vm845_vm8 = vweird.f32 %v758_v6 }
 0x4d1   :  { %1006 = vmatpush.msrb.mxu1 %v625_v18  ;;  %1820 = vmatpush.msrb.mxu3 %v625_v18  ;;  %v852_v31 = vor.u32 1.1754944e-38, %v851_v51  ;;  %vm850_vm10 = vcmp.eq.f32.partialorder %v849_v24, 8.507059e+37 }
 0x4d2   :  { %v828_v54 = vmul.f32 %v1892_v7, %v827_v52  ;;  %v888_v13 = vsub.f32 %v2400_v17, %v824_v5 }
 0x4d4   :  { %v829_v9 = vadd.f32 %v1892_v7, %v828_v54  ;;  %1758 = vmatmul.msk.f32.gmra.mxu2 %vm273_vm1, %v888_v13 }
 0x4d5   :  { %v1894_v20 = vpop.eup %1893 }
 0x4d6   :  { %v841_v2 = vmul.f32 %v1894_v20, %v758_v6  ;;  %v761_v22 = vpop.xlane.xlu1 %760  ;;  %v833_v41 = vsel %vm832_vm5, %v1892_v7, %v829_v9  ;;  %vm846_vm7 = vweird.f32 %v1894_v20  ;;  %v623_v9 = vld [vmem:[%s2890_s6] sm:$0xff] }
 0x4d7   :  { %1895 = vrcp.f32 %v761_v22  ;;  %v838_v50 = vsel %vm835_vm6, %v837_v3, %v833_v41  ;;  %vm847_vm9 = vmor %vm845_vm8, %vm846_vm7  ;;  %v866_v42 = vand.u32 2147483648, %v761_v22  ;;  %v864_v11 = vand.u32 2147483647, %v761_v22 }
 0x4d8   :  { %v842_v1 = vsub.f32 1.0, %v841_v2  ;;  %v839_v63 = vmul.f32 %v2566_v10, %v838_v50  ;;  %vm860_vm12 = vweird.f32 %v761_v22 }
 0x4d9   :  { %v867_v8 = vor.u32 1.1754944e-38, %v866_v42  ;;  %vm865_vm2 = vcmp.eq.f32.partialorder %v864_v11, 8.507059e+37 }
 0x4da   :  { %v843_v59 = vmul.f32 %v1894_v20, %v842_v1  ;;  %v889_v44 = vsub.f32 %v2412_v53, %v839_v63 }
 0x4dc   :  { %v844_v61 = vadd.f32 %v1894_v20, %v843_v59  ;;  %1759 = vmatmul.msk.f32.gmra.mxu2 %vm273_vm1, %v889_v44 }
 0x4dd   :  { %v1896_v62 = vpop.eup %1895 }
 0x4de   :  { %v856_v15 = vmul.f32 %v1896_v62, %v761_v22  ;;  %v764_v29 = vpop.xlane.xlu0 %763  ;;  %v848_v48 = vsel %vm847_vm9, %v1894_v20, %v844_v61  ;;  %vm861_vm11 = vweird.f32 %v1896_v62 }
 0x4df   :  { %1897 = vrcp.f32 %v764_v29  ;;  %v853_v10 = vsel %vm850_vm10, %v852_v31, %v848_v48  ;;  %vm862_vm13 = vmor %vm860_vm12, %vm861_vm11  ;;  %v879_v32 = vand.u32 2147483647, %v764_v29  ;;  %vm875_vm4 = vweird.f32 %v764_v29 }
 0x4e0   :  { %v857_v55 = vsub.f32 1.0, %v856_v15  ;;  %v854_v30 = vmul.f32 %v2570_v26, %v853_v10  ;;  %v881_v26 = vand.u32 2147483648, %v764_v29 }
 0x4e1   :  { %vm880_vm15 = vcmp.eq.f32.partialorder %v879_v32, 8.507059e+37  ;;  %v1936_v32 = vld [vmem:[%s2887_s3 + $0x8] sm:$0xff] }
 0x4e2   :  { %v858_v25 = vmul.f32 %v1896_v62, %v857_v55  ;;  %v890_v37 = vsub.f32 %v2425_v47, %v854_v30  ;;  %v882_v5 = vor.u32 1.1754944e-38, %v881_v26 }
 0x4e4   :  { %v859_v28 = vadd.f32 %v1896_v62, %v858_v25  ;;  %1760 = vmatmul.msk.f32.gmra.mxu2 %vm273_vm1, %v890_v37 }
 0x4e5   :  { %v1898_v39 = vpop.eup %1897 }
 0x4e6   :  { %v871_v38 = vmul.f32 %v1898_v39, %v764_v29  ;;  %v863_v40 = vsel %vm862_vm13, %v1896_v62, %v859_v28  ;;  %vm876_vm0 = vweird.f32 %v1898_v39 }
 0x4e7   :  { %v868_v7 = vsel %vm865_vm2, %v867_v8, %v863_v40  ;;  %vm877_vm14 = vmor %vm875_vm4, %vm876_vm0 }
 0x4e8   :  { %v872_v46 = vsub.f32 1.0, %v871_v38  ;;  %v869_v45 = vmul.f32 %v2574_v14, %v868_v7  ;;  %v624_v14 = vld [vmem:[%s2890_s6 + $0x8] sm:$0xff] }
 0x4e9   :  { %1007 = vmatpush.msrb.mxu1 %v624_v14  ;;  %1821 = vmatpush.msrb.mxu3 %v624_v14  ;;  %v1938_v14 = vld [vmem:[%s2887_s3 + $0x18] sm:$0xff] }
 0x4ea   :  { %v873_v6 = vmul.f32 %v1898_v39, %v872_v46  ;;  %v891_v52 = vsub.f32 %v2443_v21, %v869_v45  ;;  %v1935_v46 = vld [vmem:[%s2887_s3] sm:$0xff] }
 0x4eb   :  { %1008 = vmatpush.msrb.mxu1 %v623_v9  ;;  %1822 = vmatpush.msrb.mxu3 %v623_v9 }
 0x4ec   :  { %v874_v58 = vadd.f32 %v1898_v39, %v873_v6  ;;  %1761 = vmatmul.msk.f32.gmra.mxu2 %vm273_vm1, %v891_v52 }
 0x4ee   :  { %v878_v54 = vsel %vm877_vm14, %v1898_v39, %v874_v58 }
 0x4ef   :  { %v883_v57 = vsel %vm880_vm15, %v882_v5, %v878_v54  ;;  %v1937_v54 = vld [vmem:[%s2887_s3 + $0x10] sm:$0xff] }
 0x4f0   :  { %v884_v4 = vmul.f32 %v2578_v19, %v883_v57 }
 0x4f2   :  { %v892_v13 = vsub.f32 %v2454_v27, %v884_v4 }
 0x4f4   :  { %1762 = vmatmul.msk.f32.gmra.mxu2 %vm273_vm1, %v892_v13 }
 0x53f   :  { %v934_v20 = vpop.f32.mrf.mxu2 }
 0x540   :  { %v958_v49 = vadd.f32 %v934_v20, %v2504_v0 }
 0x542   :  { %1763 = vmatmul.msk.f32.vlgmr.msrb.gmra.mxu1 %vm163_vm3, %v958_v49 }
 0x547   :  { %v937_v19 = vpop.f32.mrf.mxu2 }
 0x548   :  { %v959_v18 = vadd.f32 %v937_v19, %v2501_v60  ;;  %v1939_v19 = vld [vmem:[%s2887_s3 + $0x20] sm:$0xff] }
 0x54a   :  { %1764 = vmatmul.msk.f32.gmra.mxu1 %vm163_vm3, %v959_v18 }
 0x54f   :  { %v940_v3 = vpop.f32.mrf.mxu2 }
 0x550   :  { %v960_v2 = vadd.f32 %v940_v3, %v2496_v23 }
 0x552   :  { %1765 = vmatmul.msk.f32.gmra.mxu1 %vm163_vm3, %v960_v2 }
 0x557   :  { %v943_v22 = vpop.f32.mrf.mxu2 }
 0x558   :  { %v961_v41 = vadd.f32 %v943_v22, %v2493_v35  ;;  %v1940_v22 = vld [vmem:[%s2887_s3 + $0x28] sm:$0xff] }
 0x55a   :  { %1766 = vmatmul.msk.f32.gmra.mxu1 %vm163_vm3, %v961_v41 }
 0x55f   :  { %v946_v1 = vpop.f32.mrf.mxu2 }
 0x560   :  { %v962_v0 = vadd.f32 %v946_v1, %v2488_v36 }
 0x562   :  { %1767 = vmatmul.msk.f32.gmra.mxu1 %vm163_vm3, %v962_v0 }
 0x567   :  { %v949_v50 = vpop.f32.mrf.mxu2 }
 0x568   :  { %v963_v60 = vadd.f32 %v949_v50, %v2485_v56  ;;  %v1833_v56 = vld [vmem:[%s2891_s7] ss:$0 sm:$0xff]  ;;  %v1941_v50 = vld [vmem:[%s2887_s3 + $0x30] sm:$0xff] }
 0x56a   :  { %1768 = vmatmul.msk.f32.vlgmr.msrb.gmra.mxu3 %vm163_vm3, %v963_v60 }
 0x56f   :  { %v952_v63 = vpop.f32.mrf.mxu2 }
 0x570   :  { %v964_v23 = vadd.f32 %v952_v63, %v2480_v34 }
 0x572   :  { %1769 = vmatmul.msk.f32.gmra.mxu3 %vm163_vm3, %v964_v23 }
 0x577   :  { %v955_v59 = vpop.f32.mrf.mxu2 }
 0x578   :  { %v965_v35 = vadd.f32 %v955_v59, %v2478_v33  ;;  %v1942_v59 = vld [vmem:[%s2887_s3 + $0x38] sm:$0xff] }
 0x57a   :  { %1770 = vmatmul.msk.f32.gmra.mxu3 %vm163_vm3, %v965_v35 }
 0x5bf   :  { %v1010_v51 = vpop.f32.mrf.mxu1 }
 0x5c0   :  { %v1011_v39 = vadd.f32 %v1833_v56, %v1010_v51 }
 0x5c2   :  { %v2663_v40 = vmax.f32 %v1011_v39, 0.0 }
 0x5c7   :  { %v1013_v24 = vpop.f32.mrf.mxu1 }
 0x5c8   :  { %v1014_v37 = vadd.f32 %v1833_v56, %v1013_v24 }
 0x5ca   :  { %v2660_v38 = vmax.f32 %v1014_v37, 0.0 }
 0x5cf   :  { %v1016_v36 = vpop.f32.mrf.mxu1 }
 0x5d0   :  { %v1017_v25 = vadd.f32 %v1833_v56, %v1016_v36 }
 0x5d2   :  { %v2655_v8 = vmax.f32 %v1017_v25, 0.0 }
 0x5d7   :  { %v1019_v61 = vpop.f32.mrf.mxu1 }
 0x5d8   :  { %v1020_v42 = vadd.f32 %v1833_v56, %v1019_v61 }
 0x5da   :  { %v2652_v28 = vmax.f32 %v1020_v42, 0.0 }
 0x5df   :  { %v1022_v29 = vpop.f32.mrf.mxu1 }
 0x5e0   :  { %v1023_v33 = vadd.f32 %v1833_v56, %v1022_v29 }
 0x5e2   :  { %v2647_v11 = vmax.f32 %v1023_v33, 0.0 }
 0x5ed   :  { %v1025_v44 = vpop.f32.mrf.mxu3 }
 0x5ee   :  { %v1026_v48 = vadd.f32 %v1833_v56, %v1025_v44 }
 0x5f0   :  { %v2644_v30 = vmax.f32 %v1026_v48, 0.0 }
 0x5f5   :  { %v1028_v62 = vpop.f32.mrf.mxu3 }
 0x5f6   :  { %v1029_v15 = vadd.f32 %v1833_v56, %v1028_v62 }
 0x5f8   :  { %v2639_v10 = vmax.f32 %v1029_v15, 0.0 }
 0x5fd   :  { %v1031_v31 = vpop.f32.mrf.mxu3 }
 0x5fe   :  { %v1032_v34 = vadd.f32 %v1833_v56, %v1031_v31 }
 0x600   :  { %v2637_v55 = vmax.f32 %v1032_v34, 0.0 }
 0x602   :  { %1776 = vmatpush.xpose.msk.msrb.mxu0 %vm163_vm3, %v2637_v55  ;;  %1346 = vmatpush.msra.mxu3 %v2637_v55 }
 0x604   :  { %1347 = vmatpush.msra.mxu3 %v2639_v10 }
 0x606   :  { %1777 = vmatpush.xpose.msk.msrb.mxu0 %vm163_vm3, %v2639_v10  ;;  %1348 = vmatpush.msra.mxu3 %v2644_v30 }
 0x608   :  { %1349 = vmatpush.msra.mxu3 %v2647_v11 }
 0x60a   :  { %1778 = vmatpush.xpose.msk.msrb.mxu0 %vm163_vm3, %v2644_v30  ;;  %1350 = vmatpush.msra.mxu3 %v2652_v28 }
 0x60c   :  { %1351 = vmatpush.msra.mxu3 %v2655_v8 }
 0x60e   :  { %1779 = vmatpush.xpose.msk.msrb.mxu0 %vm163_vm3, %v2647_v11  ;;  %1352 = vmatpush.msra.mxu3 %v2660_v38 }
 0x610   :  { %1353 = vmatpush.msra.mxu3 %v2663_v40 }
 0x612   :  { %1780 = vmatpush.xpose.msk.msrb.mxu0 %vm163_vm3, %v2652_v28 }
 0x616   :  { %1781 = vmatpush.xpose.msk.msrb.mxu0 %vm163_vm3, %v2655_v8 }
 0x61a   :  { %1782 = vmatpush.xpose.msk.msrb.mxu0 %vm163_vm3, %v2660_v38 }
 0x61e   :  { %1783 = vmatpush.xpose.msk.msrb.mxu0 %vm163_vm3, %v2663_v40 }
 0x621   :  { %1784 = vmatmul.msk.f32.vlgmr.msrb.gmra.mxu0 %vm163_vm3, %v2663_v40 }
 0x629   :  { %1785 = vmatmul.msk.f32.gmra.mxu0 %vm163_vm3, %v2660_v38 }
 0x631   :  { %1786 = vmatmul.msk.f32.gmra.mxu0 %vm163_vm3, %v2655_v8 }
 0x639   :  { %1787 = vmatmul.msk.f32.gmra.mxu0 %vm163_vm3, %v2652_v28 }
 0x641   :  { %1788 = vmatmul.msk.f32.gmra.mxu0 %vm163_vm3, %v2647_v11 }
 0x649   :  { %1789 = vmatmul.msk.f32.gmra.mxu0 %vm163_vm3, %v2644_v30 }
 0x651   :  { %1790 = vmatmul.msk.f32.gmra.mxu0 %vm163_vm3, %v2639_v10 }
 0x659   :  { %1791 = vmatmul.msk.f32.gmra.mxu0 %vm163_vm3, %v2637_v55 }
 0x69e   :  { %v1090_v7 = vpop.f32.mrf.mxu0 }
 0x69f   :  { %v1091_v45 = vadd.f32 %v1935_v46, %v1090_v7 }
 0x6a1   :  { %v1114_v26 = vsel %vm273_vm1, %v1091_v45, -inf }
 0x6a2   :  { %1115 = vmax.xlane.f32.xlu2 %v1114_v26 }
 0x6a6   :  { %v1093_v6 = vpop.f32.mrf.mxu0 }
 0x6a7   :  { %v1094_v52 = vadd.f32 %v1936_v32, %v1093_v6 }
 0x6a9   :  { %v1117_v58 = vsel %vm273_vm1, %v1094_v52, -inf }
 0x6aa   :  { %1118 = vmax.xlane.f32.xlu1 %v1117_v58 }
 0x6ae   :  { %v1096_v5 = vpop.f32.mrf.mxu0 }
 0x6af   :  { %v1097_v57 = vadd.f32 %v1937_v54, %v1096_v5 }
 0x6b1   :  { %v1120_v4 = vsel %vm273_vm1, %v1097_v57, -inf }
 0x6b2   :  { %1121 = vmax.xlane.f32.xlu0 %v1120_v4 }
 0x6b6   :  { %v1099_v13 = vpop.f32.mrf.mxu0 }
 0x6b7   :  { %v1100_v9 = vadd.f32 %v1938_v14, %v1099_v13 }
 0x6b9   :  { %v1123_v20 = vsel %vm273_vm1, %v1100_v9, -inf }
 0x6ba   :  { %1124 = vmax.xlane.f32.xlu2 %v1123_v20 }
 0x6be   :  { %v1102_v49 = vpop.f32.mrf.mxu0 }
 0x6bf   :  { %v1103_v18 = vadd.f32 %v1939_v19, %v1102_v49 }
 0x6c1   :  { %v1126_v3 = vsel %vm273_vm1, %v1103_v18, -inf }
 0x6c2   :  { %1127 = vmax.xlane.f32.xlu1 %v1126_v3 }
 0x6c6   :  { %v1105_v2 = vpop.f32.mrf.mxu0 }
 0x6c7   :  { %v1106_v41 = vadd.f32 %v1940_v22, %v1105_v2 }
 0x6c9   :  { %v1129_v1 = vsel %vm273_vm1, %v1106_v41, -inf }
 0x6ca   :  { %1130 = vmax.xlane.f32.xlu0 %v1129_v1 }
 0x6ce   :  { %v1108_v0 = vpop.f32.mrf.mxu0 }
 0x6cf   :  { %v1109_v60 = vadd.f32 %v1941_v50, %v1108_v0 }
 0x6d1   :  { %v1132_v63 = vsel %vm273_vm1, %v1109_v60, -inf }
 0x6d2   :  { %1133 = vmax.xlane.f32.xlu2 %v1132_v63 }
 0x6d6   :  { %v1111_v23 = vpop.f32.mrf.mxu0 }
 0x6d7   :  { %v1112_v35 = vadd.f32 %v1942_v59, %v1111_v23 }
 0x6d9   :  { %v1135_v51 = vsel %vm273_vm1, %v1112_v35, -inf }
 0x6da   :  { %1136 = vmax.xlane.f32.xlu0 %v1135_v51 }
 0x715   :  { %v1116_v24 = vpop.xlane.xlu2 %1115 }
 0x716   :  { %v1138_v36 = vsub.f32 %v1091_v45, %v1116_v24 }
 0x718   :  { %v1146_v44 = vmul.f32 1.442695, %v1138_v36 }
 0x71a   :  { %1899 = vpow2.f32 %v1146_v44 }
 0x71d   :  { %v1119_v61 = vpop.xlane.xlu1 %1118 }
 0x71e   :  { %v1139_v62 = vsub.f32 %v1094_v52, %v1119_v61 }
 0x720   :  { %v2725_v56 = vpop.eup %1899  ;;  %v1148_v31 = vmul.f32 1.442695, %v1139_v62 }
 0x721   :  { %v1162_v15 = vsel %vm273_vm1, %v2725_v56, 0.0 }
 0x722   :  { %1901 = vpow2.f32 %v1148_v31  ;;  %1163 = vadd.xlane.f32.xlu1 %v1162_v15 }
 0x725   :  { %v1122_v34 = vpop.xlane.xlu0 %1121 }
 0x726   :  { %v1140_v29 = vsub.f32 %v1097_v57, %v1122_v34 }
 0x728   :  { %v2729_v48 = vpop.eup %1901  ;;  %v1150_v33 = vmul.f32 1.442695, %v1140_v29 }
 0x729   :  { %v1165_v42 = vsel %vm273_vm1, %v2729_v48, 0.0 }
 0x72a   :  { %1903 = vpow2.f32 %v1150_v33  ;;  %1166 = vadd.xlane.f32.xlu2 %v1165_v42 }
 0x72d   :  { %v1125_v25 = vpop.xlane.xlu2 %1124 }
 0x72e   :  { %v1141_v37 = vsub.f32 %v1100_v9, %v1125_v25 }
 0x730   :  { %v2733_v39 = vpop.eup %1903  ;;  %v1152_v7 = vmul.f32 1.442695, %v1141_v37 }
 0x731   :  { %v1168_v46 = vsel %vm273_vm1, %v2733_v39, 0.0 }
 0x732   :  { %1905 = vpow2.f32 %v1152_v7  ;;  %1169 = vadd.xlane.f32.xlu1 %v1168_v46 }
 0x735   :  { %v1128_v45 = vpop.xlane.xlu1 %1127 }
 0x736   :  { %v1142_v26 = vsub.f32 %v1103_v18, %v1128_v45 }
 0x738   :  { %v2737_v6 = vpop.eup %1905  ;;  %v1154_v32 = vmul.f32 1.442695, %v1142_v26 }
 0x739   :  { %v1171_v52 = vsel %vm273_vm1, %v2737_v6, 0.0 }
 0x73a   :  { %1907 = vpow2.f32 %v1154_v32  ;;  %1172 = vadd.xlane.f32.xlu0 %v1171_v52 }
 0x73d   :  { %v1131_v58 = vpop.xlane.xlu0 %1130 }
 0x73e   :  { %v1143_v5 = vsub.f32 %v1106_v41, %v1131_v58 }
 0x740   :  { %v2741_v54 = vpop.eup %1907  ;;  %v1156_v57 = vmul.f32 1.442695, %v1143_v5 }
 0x741   :  { %v1174_v4 = vsel %vm273_vm1, %v2741_v54, 0.0 }
 0x742   :  { %1909 = vpow2.f32 %v1156_v57  ;;  %1175 = vadd.xlane.f32.xlu2 %v1174_v4 }
 0x745   :  { %v1134_v13 = vpop.xlane.xlu2 %1133 }
 0x746   :  { %v1144_v14 = vsub.f32 %v1109_v60, %v1134_v13 }
 0x748   :  { %v2745_v9 = vpop.eup %1909  ;;  %v1158_v20 = vmul.f32 1.442695, %v1144_v14 }
 0x749   :  { %v1177_v49 = vsel %vm273_vm1, %v2745_v9, 0.0 }
 0x74a   :  { %1911 = vpow2.f32 %v1158_v20  ;;  %1178 = vadd.xlane.f32.xlu1 %v1177_v49 }
 0x74d   :  { %v1137_v19 = vpop.xlane.xlu0 %1136 }
 0x74e   :  { %v1145_v18 = vsub.f32 %v1112_v35, %v1137_v19 }
 0x750   :  { %v2749_v3 = vpop.eup %1911  ;;  %v1160_v2 = vmul.f32 1.442695, %v1145_v18 }
 0x751   :  { %v1180_v22 = vsel %vm273_vm1, %v2749_v3, 0.0 }
 0x752   :  { %1913 = vpow2.f32 %v1160_v2  ;;  %1181 = vadd.xlane.f32.xlu0 %v1180_v22 }
 0x758   :  { %v2753_v41 = vpop.eup %1913 }
 0x759   :  { %v1183_v1 = vsel %vm273_vm1, %v2753_v41, 0.0 }
 0x75a   :  { %1184 = vadd.xlane.f32.xlu2 %v1183_v1 }
 0x795   :  { %v1164_v0 = vpop.xlane.xlu1 %1163 }
 0x796   :  { %1915 = vrcp.f32 %v1164_v0  ;;  %v1197_v59 = vand.u32 2147483648, %v1164_v0  ;;  %v1195_v51 = vand.u32 2147483647, %v1164_v0  ;;  %vm1191_vm6 = vweird.f32 %v1164_v0 }
 0x798   :  { %v1198_v44 = vor.u32 1.1754944e-38, %v1197_v59  ;;  %vm1196_vm8 = vcmp.eq.f32.partialorder %v1195_v51, 8.507059e+37 }
 0x79c   :  { %v1916_v50 = vpop.eup %1915 }
 0x79d   :  { %v1187_v60 = vmul.f32 %v1916_v50, %v1164_v0  ;;  %v1167_v63 = vpop.xlane.xlu2 %1166  ;;  %vm1192_vm5 = vweird.f32 %v1916_v50 }
 0x79e   :  { %1917 = vrcp.f32 %v1167_v63  ;;  %vm1193_vm7 = vmor %vm1191_vm6, %vm1192_vm5  ;;  %v1212_v42 = vand.u32 2147483648, %v1167_v63  ;;  %v1210_v37 = vand.u32 2147483647, %v1167_v63  ;;  %vm1206_vm10 = vweird.f32 %v1167_v63 }
 0x79f   :  { %v1188_v23 = vsub.f32 1.0, %v1187_v60 }
 0x7a0   :  { %v1213_v45 = vor.u32 1.1754944e-38, %v1212_v42  ;;  %vm1211_vm12 = vcmp.eq.f32.partialorder %v1210_v37, 8.507059e+37 }
 0x7a1   :  { %v1189_v35 = vmul.f32 %v1916_v50, %v1188_v23 }
 0x7a3   :  { %v1190_v24 = vadd.f32 %v1916_v50, %v1189_v35 }
 0x7a4   :  { %v1918_v36 = vpop.eup %1917 }
 0x7a5   :  { %v1194_v61 = vsel %vm1193_vm7, %v1916_v50, %v1190_v24  ;;  %v1202_v62 = vmul.f32 %v1918_v36, %v1167_v63  ;;  %v1170_v31 = vpop.xlane.xlu1 %1169  ;;  %vm1207_vm9 = vweird.f32 %v1918_v36 }
 0x7a6   :  { %v1199_v15 = vsel %vm1196_vm8, %v1198_v44, %v1194_v61  ;;  %1919 = vrcp.f32 %v1170_v31  ;;  %vm1208_vm11 = vmor %vm1206_vm10, %vm1207_vm9  ;;  %v1225_v4 = vand.u32 2147483647, %v1170_v31  ;;  %vm1221_vm2 = vweird.f32 %v1170_v31 }
 0x7a7   :  { %v1200_v34 = vmul.f32 %v2725_v56, %v1199_v15  ;;  %v1203_v29 = vsub.f32 1.0, %v1202_v62 }
 0x7a8   :  { %vm1226_vm4 = vcmp.eq.f32.partialorder %v1225_v4, 8.507059e+37 }
 0x7a9   :  { %v1204_v33 = vmul.f32 %v1918_v36, %v1203_v29  ;;  %v1306_v25 = vsub.f32 %v2370_v12, %v1200_v34  ;;  %v1227_v12 = vand.u32 2147483648, %v1170_v31  ;;  %v1774_v29 = vld [vmem:[%s2890_s6 + $0x38] sm:$0xff] }
 0x7aa   :  { %1426 = vmatpush.msra.mxu2 %v1774_v29 }
 0x7ab   :  { %v1205_v7 = vadd.f32 %v1918_v36, %v1204_v33  ;;  %1792 = vmatmul.msk.f32.vlgmr.msra.gmra.mxu3 %vm273_vm1, %v1306_v25  ;;  %v1228_v49 = vor.u32 1.1754944e-38, %v1227_v12 }
 0x7ac   :  { %v1920_v46 = vpop.eup %1919 }
 0x7ad   :  { %v1217_v26 = vmul.f32 %v1920_v46, %v1170_v31  ;;  %v1173_v32 = vpop.xlane.xlu0 %1172  ;;  %v1209_v52 = vsel %vm1208_vm11, %v1918_v36, %v1205_v7  ;;  %vm1222_vm13 = vweird.f32 %v1920_v46 }
 0x7ae   :  { %1921 = vrcp.f32 %v1173_v32  ;;  %v1214_v58 = vsel %vm1211_vm12, %v1213_v45, %v1209_v52  ;;  %vm1223_vm0 = vmor %vm1221_vm2, %vm1222_vm13  ;;  %v1242_v50 = vand.u32 2147483648, %v1173_v32  ;;  %vm1236_vm15 = vweird.f32 %v1173_v32 }
 0x7af   :  { %v1218_v56 = vsub.f32 1.0, %v1217_v26  ;;  %v1215_v5 = vmul.f32 %v2729_v48, %v1214_v58 }
 0x7b0   :  { %v1243_v59 = vor.u32 1.1754944e-38, %v1242_v50 }
 0x7b1   :  { %v1219_v57 = vmul.f32 %v1920_v46, %v1218_v56  ;;  %v1307_v13 = vsub.f32 %v2379_v43, %v1215_v5  ;;  %v1240_v43 = vand.u32 2147483647, %v1173_v32 }
 0x7b3   :  { %v1220_v14 = vadd.f32 %v1920_v46, %v1219_v57  ;;  %1793 = vmatmul.msk.f32.gmra.mxu3 %vm273_vm1, %v1307_v13  ;;  %vm1241_vm6 = vcmp.eq.f32.partialorder %v1240_v43, 8.507059e+37 }
 0x7b4   :  { %v1922_v20 = vpop.eup %1921 }
 0x7b5   :  { %v1232_v19 = vmul.f32 %v1922_v20, %v1173_v32  ;;  %v1176_v18 = vpop.xlane.xlu2 %1175  ;;  %v1224_v2 = vsel %vm1223_vm0, %v1920_v46, %v1220_v14  ;;  %vm1237_vm14 = vweird.f32 %v1922_v20 }
 0x7b6   :  { %1923 = vrcp.f32 %v1176_v18  ;;  %v1229_v48 = vsel %vm1226_vm4, %v1228_v49, %v1224_v2  ;;  %vm1238_vm5 = vmor %vm1236_vm15, %vm1237_vm14  ;;  %v1257_v62 = vand.u32 2147483648, %v1176_v18  ;;  %vm1251_vm8 = vweird.f32 %v1176_v18 }
 0x7b7   :  { %v1233_v22 = vsub.f32 1.0, %v1232_v19  ;;  %v1230_v1 = vmul.f32 %v2733_v39, %v1229_v48 }
 0x7b8   :  { %v1258_v33 = vor.u32 1.1754944e-38, %v1257_v62 }
 0x7b9   :  { %v1234_v0 = vmul.f32 %v1922_v20, %v1233_v22  ;;  %v1308_v60 = vsub.f32 %v2388_v16, %v1230_v1  ;;  %v1255_v16 = vand.u32 2147483647, %v1176_v18 }
 0x7bb   :  { %v1235_v63 = vadd.f32 %v1922_v20, %v1234_v0  ;;  %1794 = vmatmul.msk.f32.gmra.mxu3 %vm273_vm1, %v1308_v60  ;;  %vm1256_vm10 = vcmp.eq.f32.partialorder %v1255_v16, 8.507059e+37 }
 0x7bc   :  { %v1924_v23 = vpop.eup %1923 }
 0x7bd   :  { %v1247_v35 = vmul.f32 %v1924_v23, %v1176_v18  ;;  %v1179_v51 = vpop.xlane.xlu1 %1178  ;;  %v1239_v24 = vsel %vm1238_vm5, %v1922_v20, %v1235_v63  ;;  %vm1252_vm7 = vweird.f32 %v1924_v23 }
 0x7be   :  { %1925 = vrcp.f32 %v1179_v51  ;;  %v1244_v39 = vsel %vm1241_vm6, %v1243_v59, %v1239_v24  ;;  %vm1253_vm9 = vmor %vm1251_vm8, %vm1252_vm7  ;;  %v1272_v26 = vand.u32 2147483648, %v1179_v51  ;;  %v1270_v32 = vand.u32 2147483647, %v1179_v51 }
 0x7bf   :  { %v1248_v36 = vsub.f32 1.0, %v1247_v35  ;;  %v1245_v44 = vmul.f32 %v2737_v6, %v1244_v39  ;;  %v1773_v6 = vld [vmem:[%s2890_s6 + $0x30] sm:$0xff]  ;;  %vm1266_vm12 = vweird.f32 %v1179_v51 }
 0x7c0   :  { %1427 = vmatpush.msra.mxu2 %v1773_v6  ;;  %v1273_v5 = vor.u32 1.1754944e-38, %v1272_v26  ;;  %vm1271_vm2 = vcmp.eq.f32.partialorder %v1270_v32, 8.507059e+37 }
 0x7c1   :  { %v1249_v61 = vmul.f32 %v1924_v23, %v1248_v36  ;;  %v1309_v31 = vsub.f32 %v2400_v17, %v1245_v44 }
 0x7c3   :  { %v1250_v15 = vadd.f32 %v1924_v23, %v1249_v61  ;;  %1795 = vmatmul.msk.f32.gmra.mxu3 %vm273_vm1, %v1309_v31 }
 0x7c4   :  { %v1926_v34 = vpop.eup %1925 }
 0x7c5   :  { %v1262_v42 = vmul.f32 %v1926_v34, %v1179_v51  ;;  %v1182_v25 = vpop.xlane.xlu0 %1181  ;;  %v1254_v37 = vsel %vm1253_vm9, %v1924_v23, %v1250_v15  ;;  %vm1267_vm11 = vweird.f32 %v1926_v34  ;;  %vm1561_vm9 = vcmask 1041409  }
 0x7c6   :  { %1927 = vrcp.f32 %v1182_v25  ;;  %v1259_v7 = vsel %vm1256_vm10, %v1258_v33, %v1254_v37  ;;  %vm1268_vm13 = vmor %vm1266_vm12, %vm1267_vm11  ;;  %v1287_v14 = vand.u32 2147483648, %v1182_v25  ;;  %vm1281_vm4 = vweird.f32 %v1182_v25 }
 0x7c7   :  { %v1263_v17 = vsub.f32 1.0, %v1262_v42  ;;  %v1260_v46 = vmul.f32 %v2741_v54, %v1259_v7  ;;  %vm1688_vm11 = vcmask 8192  }
 0x7c8   :  { %v1288_v22 = vor.u32 1.1754944e-38, %v1287_v14 }
 0x7c9   :  { %v1264_v45 = vmul.f32 %v1926_v34, %v1263_v17  ;;  %v1310_v52 = vsub.f32 %v2412_v53, %v1260_v46  ;;  %v1285_v53 = vand.u32 2147483647, %v1182_v25  ;;  %v1999_v46 = vmov 0  }
 0x7ca   :  { %1829 = vset.pattern.permute.xlu1 %v1999_v46  ;;  %1831 = vset.pattern.permute.xlu2 %v1999_v46 }
 0x7cb   :  { %v1265_v56 = vadd.f32 %v1926_v34, %v1264_v45  ;;  %1796 = vmatmul.msk.f32.gmra.mxu3 %vm273_vm1, %v1310_v52  ;;  %vm1286_vm15 = vcmp.eq.f32.partialorder %v1285_v53, 8.507059e+37  ;;  %1830 = vset.pattern.permute.xlu0 %v1999_v46  ;;  %v1503_v46 = vld [vmem:[%s2892_s8] sm:$0xff] }
 0x7cc   :  { %v1928_v58 = vpop.eup %1927 }
 0x7cd   :  { %v1277_v57 = vmul.f32 %v1928_v58, %v1182_v25  ;;  %v1185_v12 = vpop.xlane.xlu2 %1184  ;;  %v1269_v4 = vsel %vm1268_vm13, %v1926_v34, %v1265_v56  ;;  %vm1282_vm0 = vweird.f32 %v1928_v58 }
 0x7ce   :  { %1929 = vrcp.f32 %v1185_v12  ;;  %v1274_v54 = vsel %vm1271_vm2, %v1273_v5, %v1269_v4  ;;  %vm1283_vm14 = vmor %vm1281_vm4, %vm1282_vm0  ;;  %v1300_v63 = vand.u32 2147483647, %v1185_v12  ;;  %vm1296_vm6 = vweird.f32 %v1185_v12  ;;  %v1515_v4 = vld [vmem:[%s2893_s9 + $0x20] sm:$0xff] }
 0x7cf   :  { %v1278_v13 = vsub.f32 1.0, %v1277_v57  ;;  %v1275_v20 = vmul.f32 %v2745_v9, %v1274_v54  ;;  %v1302_v9 = vand.u32 2147483648, %v1185_v12 }
 0x7d0   :  { %vm1301_vm8 = vcmp.eq.f32.partialorder %v1300_v63, 8.507059e+37 }
 0x7d1   :  { %v1279_v49 = vmul.f32 %v1928_v58, %v1278_v13  ;;  %v1311_v19 = vsub.f32 %v2425_v47, %v1275_v20  ;;  %v1303_v59 = vor.u32 1.1754944e-38, %v1302_v9 }
 0x7d3   :  { %v1280_v18 = vadd.f32 %v1928_v58, %v1279_v49  ;;  %1797 = vmatmul.msk.f32.gmra.mxu3 %vm273_vm1, %v1311_v19 }
 0x7d4   :  { %v1930_v2 = vpop.eup %1929 }
 0x7d5   :  { %v1292_v48 = vmul.f32 %v1930_v2, %v1185_v12  ;;  %v1284_v1 = vsel %vm1283_vm14, %v1928_v58, %v1280_v18  ;;  %vm1297_vm5 = vweird.f32 %v1930_v2 }
 0x7d6   :  { %v1289_v0 = vsel %vm1286_vm15, %v1288_v22, %v1284_v1  ;;  %vm1298_vm7 = vmor %vm1296_vm6, %vm1297_vm5 }
 0x7d7   :  { %v1293_v50 = vsub.f32 1.0, %v1292_v48  ;;  %v1290_v43 = vmul.f32 %v2749_v3, %v1289_v0  ;;  %v1772_v3 = vld [vmem:[%s2890_s6 + $0x28] sm:$0xff] }
 0x7d8   :  { %1428 = vmatpush.msra.mxu2 %v1772_v3  ;;  %v1511_v3 = vld [vmem:[%s2893_s9] sm:$0xff] }
 0x7d9   :  { %v1294_v60 = vmul.f32 %v1930_v2, %v1293_v50  ;;  %v1312_v47 = vsub.f32 %v2443_v21, %v1290_v43  ;;  %v1771_v21 = vld [vmem:[%s2890_s6 + $0x20] sm:$0xff]  ;;  %v1513_v50 = vld [vmem:[%s2893_s9 + $0x10] sm:$0xff] }
 0x7da   :  { %1429 = vmatpush.msra.mxu2 %v1771_v21 }
 0x7db   :  { %v1295_v23 = vadd.f32 %v1930_v2, %v1294_v60  ;;  %1798 = vmatmul.msk.f32.gmra.mxu3 %vm273_vm1, %v1312_v47 }
 0x7dd   :  { %v1299_v35 = vsel %vm1298_vm7, %v1930_v2, %v1295_v23 }
 0x7de   :  { %v1304_v51 = vsel %vm1301_vm8, %v1303_v59, %v1299_v35 }
 0x7df   :  { %v1305_v24 = vmul.f32 %v2753_v41, %v1304_v51 }
 0x7e1   :  { %v1313_v36 = vsub.f32 %v2454_v27, %v1305_v24 }
 0x7e3   :  { %1799 = vmatmul.msk.f32.gmra.mxu3 %vm273_vm1, %v1313_v36 }
 0x82e   :  { %v1355_v39 = vpop.f32.mrf.mxu3 }
 0x82f   :  { %v1379_v44 = vadd.f32 %v1355_v39, %v2663_v40 }
 0x831   :  { %1800 = vmatmul.msk.f32.vlgmr.msra.gmra.mxu2 %vm163_vm3, %v1379_v44 }
 0x836   :  { %v1358_v41 = vpop.f32.mrf.mxu3 }
 0x837   :  { %v1380_v27 = vadd.f32 %v1358_v41, %v2660_v38 }
 0x839   :  { %1801 = vmatmul.msk.f32.gmra.mxu2 %vm163_vm3, %v1380_v27 }
 0x83e   :  { %v1361_v61 = vpop.f32.mrf.mxu3 }
 0x83f   :  { %v1381_v62 = vadd.f32 %v1361_v61, %v2655_v8 }
 0x841   :  { %1802 = vmatmul.msk.f32.gmra.mxu2 %vm163_vm3, %v1381_v62 }
 0x846   :  { %v1364_v16 = vpop.f32.mrf.mxu3 }
 0x847   :  { %v1382_v31 = vadd.f32 %v1364_v16, %v2652_v28 }
 0x849   :  { %1803 = vmatmul.msk.f32.gmra.mxu2 %vm163_vm3, %v1382_v31 }
 0x84e   :  { %v1367_v15 = vpop.f32.mrf.mxu3 }
 0x84f   :  { %v1383_v40 = vadd.f32 %v1367_v15, %v2647_v11 }
 0x851   :  { %1804 = vmatmul.msk.f32.gmra.mxu2 %vm163_vm3, %v1383_v40 }
 0x856   :  { %v1370_v34 = vpop.f32.mrf.mxu3 }
 0x857   :  { %v1384_v38 = vadd.f32 %v1370_v34, %v2644_v30  ;;  %v1834_v30 = vld [vmem:[%s2891_s7 + $0x1] ss:$0 sm:$0xff] }
 0x859   :  { %1805 = vmatmul.msk.f32.gmra.mxu2 %vm163_vm3, %v1384_v38 }
 0x85e   :  { %v1373_v29 = vpop.f32.mrf.mxu3 }
 0x85f   :  { %v1385_v8 = vadd.f32 %v1373_v29, %v2639_v10  ;;  %v1518_v10 = vld [vmem:[%s2893_s9 + $0x38] sm:$0xff] }
 0x860   :  { %1556 = vperm.xlu1 %1829, %v1518_v10   ;;  %v1514_v10 = vld [vmem:[%s2893_s9 + $0x18] sm:$0xff] }
 0x861   :  { %1806 = vmatmul.msk.f32.gmra.mxu2 %vm163_vm3, %v1385_v8 }
 0x866   :  { %v1376_v6 = vpop.f32.mrf.mxu3 }
 0x867   :  { %v1386_v28 = vadd.f32 %v1376_v6, %v2637_v55 }
 0x868   :  { %1541 = vperm.xlu1 %1829, %v1515_v4  }
 0x869   :  { %1807 = vmatmul.msk.f32.gmra.mxu2 %vm163_vm3, %v1386_v28 }
 0x870   :  { %1531 = vperm.xlu1 %1829, %v1513_v50  }
 0x878   :  { %1521 = vperm.xlu1 %1829, %v1511_v3  }
 0x8b4   :  { %v1431_v33 = vpop.f32.mrf.mxu2 }
 0x8b5   :  { %v1432_v55 = vadd.f32 %v1834_v30, %v1431_v33 }
 0x8b7   :  { %v1455_v5 = vmax.f32 %v1432_v55, 0.0  ;;  %v1504_v55 = vld [vmem:[%s2892_s8 + $0x8] sm:$0xff] }
 0x8b9   :  { %v1463_v53 = vsel %vm163_vm3, %v1455_v5, 0.0  ;;  %v1508_v5 = vld [vmem:[%s2892_s8 + $0x28] sm:$0xff] }
 0x8bc   :  { %v1434_v42 = vpop.f32.mrf.mxu2 }
 0x8bd   :  { %v1435_v17 = vadd.f32 %v1834_v30, %v1434_v42 }
 0x8bf   :  { %v1456_v32 = vmax.f32 %v1435_v17, 0.0 }
 0x8c1   :  { %v1464_v13 = vsel %vm163_vm3, %v1456_v32, 0.0  ;;  %v1506_v32 = vld [vmem:[%s2892_s8 + $0x18] sm:$0xff] }
 0x8c2   :  { %v1465_v18 = vadd.f32 %v1464_v13, %v1463_v53 }
 0x8c4   :  { %v1437_v11 = vpop.f32.mrf.mxu2  ;;  %v1466_v0 = vrot.slane %v1465_v18, 4 }
 0x8c5   :  { %v1438_v52 = vadd.f32 %v1834_v30, %v1437_v11 }
 0x8c6   :  { %v1467_v63 = vadd.f32 %v1466_v0, %v1465_v18 }
 0x8c7   :  { %v1457_v54 = vmax.f32 %v1438_v52, 0.0  ;;  %v1517_v52 = vld [vmem:[%s2893_s9 + $0x30] sm:$0xff] }
 0x8c8   :  { %v1468_v36 = vrot.slane %v1467_v63, 2  ;;  %1551 = vperm.xlu0 %1830, %v1517_v52  }
 0x8c9   :  { %v1472_v22 = vsel %vm163_vm3, %v1457_v54, 0.0 }
 0x8ca   :  { %v1469_v61 = vadd.f32 %v1468_v36, %v1467_v63 }
 0x8cc   :  { %v1440_v25 = vpop.f32.mrf.mxu2  ;;  %v1470_v40 = vrot.slane %v1469_v61, 1 }
 0x8cd   :  { %v1441_v45 = vadd.f32 %v1834_v30, %v1440_v25 }
 0x8ce   :  { %v1471_v6 = vadd.f32 %v1470_v40, %v1469_v61  ;;  %v1638_v61 = vld [vmem:[%s2894_s10] sm:$0x1]  ;;  %s2000_s10 = smov [#allocation6]  }
 0x8cf   :  { %v1458_v57 = vmax.f32 %v1441_v45, 0.0  ;;  %v1512_v45 = vld [vmem:[%s2893_s9 + $0x8] sm:$0xff]  ;;  %s1695_s0 = sshll.u32 %s2000_s10, 4  ;;  %s1696_s0 = int_to_ptr.vmem [resolvable:$true] %s1695_s0 }
 0x8d1   :  { %v1473_v19 = vsel %vm163_vm3, %v1458_v57, 0.0  ;;  %v1509_v57 = vld [vmem:[%s2892_s8 + $0x30] sm:$0xff] }
 0x8d2   :  { %v1474_v48 = vadd.f32 %v1473_v19, %v1472_v22 }
 0x8d4   :  { %v1443_v37 = vpop.f32.mrf.mxu2  ;;  %v1475_v9 = vrot.slane %v1474_v48, 4 }
 0x8d5   :  { %v1444_v7 = vadd.f32 %v1834_v30, %v1443_v37  ;;  %v1516_v37 = vld [vmem:[%s2893_s9 + $0x28] sm:$0xff] }
 0x8d6   :  { %v1476_v35 = vadd.f32 %v1475_v9, %v1474_v48  ;;  %1546 = vperm.xlu2 %1831, %v1516_v37  }
 0x8d7   :  { %v1459_v56 = vmax.f32 %v1444_v7, 0.0 }
 0x8d8   :  { %v1477_v44 = vrot.slane %v1476_v35, 2 }
 0x8d9   :  { %v1481_v14 = vsel %vm163_vm3, %v1459_v56, 0.0  ;;  %v1507_v56 = vld [vmem:[%s2892_s8 + $0x20] sm:$0xff] }
 0x8da   :  { %v1478_v16 = vadd.f32 %v1477_v44, %v1476_v35 }
 0x8dc   :  { %v1446_v26 = vpop.f32.mrf.mxu2  ;;  %v1479_v38 = vrot.slane %v1478_v16, 1 }
 0x8dd   :  { %v1447_v58 = vadd.f32 %v1834_v30, %v1446_v26  ;;  %v1505_v26 = vld [vmem:[%s2892_s8 + $0x10] sm:$0xff] }
 0x8de   :  { %v1480_v33 = vadd.f32 %v1479_v38, %v1478_v16  ;;  %1536 = vperm.xlu2 %1831, %v1514_v10  }
 0x8df   :  { %v1460_v12 = vmax.f32 %v1447_v58, 0.0  ;;  %v1639_v58 = vld [vmem:[#allocation2] sm:$0x1] }
 0x8e0   :  { %1642 = vperm.xlu0 %1830, %v1639_v58  }
 0x8e1   :  { %v1482_v20 = vsel %vm163_vm3, %v1460_v12, 0.0  ;;  %v1510_v12 = vld [vmem:[%s2892_s8 + $0x38] sm:$0xff] }
 0x8e2   :  { %v1483_v49 = vadd.f32 %v1482_v20, %v1481_v14 }
 0x8e4   :  { %v1449_v2 = vpop.f32.mrf.mxu2  ;;  %v1484_v1 = vrot.slane %v1483_v49, 4 }
 0x8e5   :  { %v1450_v43 = vadd.f32 %v1834_v30, %v1449_v2 }
 0x8e6   :  { %v1485_v60 = vadd.f32 %v1484_v1, %v1483_v49  ;;  %1526 = vperm.xlu2 %1831, %v1512_v45   ;;  %v1557_v49 = vpop.permute.xlu1 %1556 }
 0x8e7   :  { %v1461_v23 = vmax.f32 %v1450_v43, 0.0 }
 0x8e8   :  { %v1486_v51 = vrot.slane %v1485_v60, 2 }
 0x8e9   :  { %v1490_v21 = vsel %vm163_vm3, %v1461_v23, 0.0 }
 0x8ea   :  { %v1487_v41 = vadd.f32 %v1486_v51, %v1485_v60 }
 0x8ec   :  { %v1452_v47 = vpop.f32.mrf.mxu2  ;;  %v1488_v31 = vrot.slane %v1487_v41, 1 }
 0x8ed   :  { %v1453_v59 = vadd.f32 %v1834_v30, %v1452_v47 }
 0x8ee   :  { %v1489_v29 = vadd.f32 %v1488_v31, %v1487_v41  ;;  %v1542_v18 = vpop.permute.xlu1 %1541 }
 0x8ef   :  { %v1462_v24 = vmax.f32 %v1453_v59, 0.0 }
 0x8f0   :  { %v1499_v11 = vsub.f32 %v1471_v6, %v1489_v29 }
 0x8f1   :  { %v1491_v39 = vsel %vm163_vm3, %v1462_v24, 0.0 }
 0x8f2   :  { %v1492_v27 = vadd.f32 %v1491_v39, %v1490_v21  ;;  %v1501_v30 = vand.u32 2147483647, %v1499_v11 }
 0x8f4   :  { %v1493_v62 = vrot.slane %v1492_v27, 4 }
 0x8f6   :  { %v1494_v15 = vadd.f32 %v1493_v62, %v1492_v27  ;;  %v1532_v1 = vpop.permute.xlu1 %1531 }
 0x8f8   :  { %v1495_v34 = vrot.slane %v1494_v15, 2 }
 0x8fa   :  { %v1496_v8 = vadd.f32 %v1495_v34, %v1494_v15 }
 0x8fc   :  { %v1497_v28 = vrot.slane %v1496_v8, 1 }
 0x8fe   :  { %v1498_v42 = vadd.f32 %v1497_v28, %v1496_v8  ;;  %v1522_v36 = vpop.permute.xlu1 %1521 }
 0x900   :  { %v1500_v25 = vsub.f32 %v1480_v33, %v1498_v42 }
 0x902   :  { %v1502_v17 = vand.u32 2147483647, %v1500_v25 }
 0x904   :  { %v1562_v7 = vsel %vm1561_vm9, %v1502_v17, %v1501_v30 }
 0x905   :  { %1808 = vmatpush.xpose.msk.msra.mxu1 %vm163_vm3, %v1562_v7 }
 0x908   :  { %1809 = vmatmul.msk.f32.vlgmr.msra.gmra.mxu1 %vm163_vm3, %v1503_v46 }
 0x910   :  { %1810 = vmatmul.msk.f32.gmra.mxu1 %vm163_vm3, %v1504_v55 }
 0x918   :  { %1811 = vmatmul.msk.f32.gmra.mxu1 %vm163_vm3, %v1505_v26 }
 0x920   :  { %1812 = vmatmul.msk.f32.gmra.mxu1 %vm163_vm3, %v1506_v32 }
 0x928   :  { %1813 = vmatmul.msk.f32.gmra.mxu1 %vm163_vm3, %v1507_v56 }
 0x930   :  { %1814 = vmatmul.msk.f32.gmra.mxu1 %vm163_vm3, %v1508_v5  ;;  %v1547_v19 = vpop.permute.xlu2 %1546 }
 0x938   :  { %1815 = vmatmul.msk.f32.gmra.mxu1 %vm163_vm3, %v1509_v57  ;;  %v1537_v22 = vpop.permute.xlu2 %1536 }
 0x93a   :  { %v1552_v48 = vpop.permute.xlu0 %1551 }
 0x940   :  { %1816 = vmatmul.msk.f32.gmra.mxu1 %vm163_vm3, %v1510_v12  ;;  %v1527_v35 = vpop.permute.xlu2 %1526 }
 0x952   :  { %v1643_v62 = vpop.permute.xlu0 %1642 }
 0x953   :  { %v1645_v16 = vperm.slane %v1643_v62, 0 }
 0x985   :  { %v1606_v4 = vpop.f32.mrf.mxu1 }
 0x986   :  { %v1607_v39 = vadd.f32 %v1606_v4, %v1522_v36 }
 0x988   :  { %v1630_v27 = vmax.f32 %v1607_v39, 0.0 }
 0x98d   :  { %v1609_v13 = vpop.f32.mrf.mxu1 }
 0x98e   :  { %v1610_v3 = vadd.f32 %v1609_v13, %v1527_v35 }
 0x990   :  { %v1631_v41 = vmax.f32 %v1610_v3, 0.0 }
 0x995   :  { %v1612_v54 = vpop.f32.mrf.mxu1 }
 0x996   :  { %v1613_v51 = vadd.f32 %v1612_v54, %v1532_v1 }
 0x998   :  { %v1632_v44 = vmax.f32 %v1613_v51, 0.0 }
 0x99d   :  { %v1615_v14 = vpop.f32.mrf.mxu1 }
 0x99e   :  { %v1616_v23 = vadd.f32 %v1615_v14, %v1537_v22 }
 0x9a0   :  { %v1633_v21 = vmax.f32 %v1616_v23, 0.0 }
 0x9a5   :  { %v1618_v20 = vpop.f32.mrf.mxu1 }
 0x9a6   :  { %v1619_v63 = vadd.f32 %v1618_v20, %v1542_v18 }
 0x9a8   :  { %v1634_v24 = vmax.f32 %v1619_v63, 0.0 }
 0x9ad   :  { %v1621_v53 = vpop.f32.mrf.mxu1 }
 0x9ae   :  { %v1622_v9 = vadd.f32 %v1621_v53, %v1547_v19 }
 0x9b0   :  { %v1635_v59 = vmax.f32 %v1622_v9, 0.0 }
 0x9b5   :  { %v1624_v2 = vpop.f32.mrf.mxu1 }
 0x9b6   :  { %v1625_v50 = vadd.f32 %v1624_v2, %v1552_v48 }
 0x9b8   :  { %v1636_v47 = vmax.f32 %v1625_v50, 0.0 }
 0x9bd   :  { %v1627_v0 = vpop.f32.mrf.mxu1 }
 0x9be   :  { %v1628_v43 = vadd.f32 %v1627_v0, %v1557_v49 }
 0x9c0   :  { %v1637_v60 = vmax.f32 %v1628_v43, 0.0 }
 0x9c2   :  { %1657 = vmatpush.msra.mxu0 %v1637_v60 }
 0x9c4   :  { %1658 = vmatpush.msra.mxu0 %v1636_v47 }
 0x9c6   :  { %1659 = vmatpush.msra.mxu0 %v1635_v59 }
 0x9c8   :  { %1660 = vmatpush.msra.mxu0 %v1634_v24 }
 0x9ca   :  { %1661 = vmatpush.msra.mxu0 %v1633_v21 }
 0x9cc   :  { %1662 = vmatpush.msra.mxu0 %v1632_v44 }
 0x9ce   :  { %1663 = vmatpush.msra.mxu0 %v1631_v41 }
 0x9d0   :  { %1664 = vmatpush.msra.mxu0 %v1630_v27 }
 0x9d1   :  { %1817 = vmatmul.msk.f32.vlgmr.msra.gmra.mxu0 %vm273_vm1, %v1638_v61 }
 0xa4e   :  { %v1666_v31 = vpop.f32.mrf.mxu0 }
 0xa4f   :  { %v1667_v15 = vadd.f32 %v1666_v31, %v1645_v16 }
 0xa51   :  { %v1818_v40 = vmul.f32 -1.442695, %v1667_v15 }
 0xa53   :  { %1931 = vpow2.f32 %v1818_v40 }
 0xa59   :  { %v1932_v34 = vpop.eup %1931 }
 0xa5a   :  { %v1672_v38 = vadd.f32 1.0, %v1932_v34 }
 0xa5c   :  { %1933 = vrcp.f32 %v1672_v38  ;;  %v1684_v28 = vand.u32 2147483648, %v1672_v38  ;;  %v1682_v42 = vand.u32 2147483647, %v1672_v38  ;;  %vm1678_vm1 = vweird.f32 %v1672_v38 }
 0xa5e   :  { %v1685_v25 = vor.u32 1.1754944e-38, %v1684_v28  ;;  %vm1683_vm12 = vcmp.eq.f32.partialorder %v1682_v42, 8.507059e+37 }
 0xa62   :  { %v1934_v29 = vpop.eup %1933 }
 0xa63   :  { %v1674_v8 = vmul.f32 %v1934_v29, %v1672_v38  ;;  %vm1679_vm3 = vweird.f32 %v1934_v29 }
 0xa64   :  { %vm1680_vm10 = vmor %vm1678_vm1, %vm1679_vm3 }
 0xa65   :  { %v1675_v6 = vsub.f32 1.0, %v1674_v8 }
 0xa67   :  { %v1676_v33 = vmul.f32 %v1934_v29, %v1675_v6 }
 0xa69   :  { %v1677_v11 = vadd.f32 %v1934_v29, %v1676_v33 }
 0xa6b   :  { %v1681_v37 = vsel %vm1680_vm10, %v1934_v29, %v1677_v11 }
 0xa6c   :  { %v1686_v30 = vsel %vm1683_vm12, %v1685_v25, %v1681_v37 }
 0xa6d   :  { %1689 = vst.msk [vmem:[#allocation6] sm:$0x1] %vm1688_vm11, %v1686_v30 }
 0xa6e   :  { %1700 = dma.vmem_to_hbm [thread:$0]  %s1696_s0, 16, %s1698_s29, [#allocation5]  }
 0xa6f   :  { %1993 = dma.done.wait [#allocation5], 16  }
 0xa70   :  { %1994 = vsyncadd [#allocation5], 4294967280 }
 0xa71   :  { %1705 = vsyncpa [#allocation4], 1 }
 0xa72   :  { %1706 = vsyncpa [#allocation5], 1 }

</bundles_post_ra>
